<compile_context>
chip_gen: v7x
topology: tpu7x:2x2x1
jax: 0.10.0
libtpu: 0.0.40
codegen_flags: <defaults>
</compile_context>

<pallas_src>
import functools
import math

import jax
import jax.numpy as jnp
from jax import lax
from jax.experimental import pallas as pl
from jax.experimental.pallas import tpu as pltpu

# ---- module hyper-params (mirrors bigram.py globals) ----
N_EMBD = 384
N_HEADS = 6
HEAD_SIZE = N_EMBD // N_HEADS          # 64
BLOCK_SIZE = 256                        # max context (tril buffer size)
NEG_INF = -1e30                         # large finite negative (NaN-safe)


def _multihead_kernel(x_ref, wqkv_ref, wo_ref, bo_ref,
                      out_ref, cat_ref, *, n_heads, head_size, q_tile):
    """One (batch, query-tile) pair per grid step.

    x_ref:    (1, T, C)    bf16  full sequence for this batch element
    wqkv_ref: (C, 3*H*hs)  bf16  [ Wq*1/sqrt(hs) | Wk | Wv ]
    wo_ref:   (H*hs, C)    bf16  output projection weight
    bo_ref:   (1, C)       f32   output projection bias
    out_ref:  (1, TQ, C)   f32   output rows for this query tile
    cat_ref:  (TQ, H*hs)   bf16  VMEM scratch (concatenated head outputs)
    """
    TQ = q_tile
    TK = x_ref.shape[1]
    hs = head_size
    hhs = n_heads * hs

    q_start = pl.multiple_of(pl.program_id(1) * TQ, 8)

    xkv = x_ref[0]                                    # (TK, C) bf16
    xq = x_ref[0, pl.ds(q_start, TQ), :]              # (TQ, C) bf16

    # Fused projections: one wide matmul for Q (query rows only) and one for
    # K|V (full sequence).  bf16 operands, f32 accumulation on the MXU.
    q_all = jnp.dot(xq, wqkv_ref[:, 0:hhs],
                    preferred_element_type=jnp.float32)          # (TQ, H*hs)
    kv_all = jnp.dot(xkv, wqkv_ref[:, hhs:3 * hhs],
                     preferred_element_type=jnp.float32)         # (TK, 2*H*hs)

    q_all = q_all.astype(jnp.bfloat16)                           # scale folded in
    k_all = kv_all[:, 0:hhs].astype(jnp.bfloat16)
    v_all = kv_all[:, hhs:2 * hhs].astype(jnp.bfloat16)

    # Additive causal-mask bias, built once and reused by every head.
    row = q_start + lax.broadcasted_iota(jnp.int32, (TQ, TK), 0)
    col = lax.broadcasted_iota(jnp.int32, (TQ, TK), 1)
    bias = jnp.where(col <= row, 0.0, NEG_INF).astype(jnp.float32)

    # Process heads in pairs so the concatenated output is written with full
    # 128-lane stores (hs = 64 alone would produce masked partial stores).
    for p in range(n_heads // 2):
        outs = []
        for h in (2 * p, 2 * p + 1):
            qh = q_all[:, h * hs:(h + 1) * hs]                   # (TQ, hs)
            kh = k_all[:, h * hs:(h + 1) * hs]                   # (TK, hs)
            vh = v_all[:, h * hs:(h + 1) * hs]                   # (TK, hs)

            s = jnp.dot(qh, kh.T,
                        preferred_element_type=jnp.float32) + bias  # (TQ, TK)
            m = jnp.max(s, axis=-1, keepdims=True)
            e = jnp.exp(s - m)                                   # f32 (VALU/EUP)
            denom = jnp.sum(e, axis=-1, keepdims=True)           # (TQ, 1)
            o = jnp.dot(e.astype(jnp.bfloat16), vh,
                        preferred_element_type=jnp.float32)      # (TQ, hs)
            # Normalize the small (TQ, hs) output, not the (TQ, TK) matrix.
            outs.append(o * pl.reciprocal(denom, approx=True))
        pair = jnp.concatenate(outs, axis=-1).astype(jnp.bfloat16)
        cat_ref[:, 2 * p * hs:2 * (p + 1) * hs] = pair

    # Single K = H*hs = 384 output projection (MXU-efficient), bf16 operands.
    proj = jnp.dot(cat_ref[...], wo_ref[...],
                   preferred_element_type=jnp.float32) + bo_ref[0]
    out_ref[0] = proj.astype(out_ref.dtype)


def multihead_forward(x, wqkv, wo, bo, *, q_tile=128):
    """x: (B, T, C) f32; wqkv: (H, C, 3*hs); wo: (H*hs, C); bo: (C,)."""
    B, T, C = x.shape
    H, _, three_hs = wqkv.shape
    hs = three_hs // 3
    hhs = H * hs
    assert H % 2 == 0, "head-pair lane-dense stores assume an even head count"

    # Query-tile size: q_tile if it divides T, else the whole sequence.
    tq = q_tile if (T % q_tile == 0) else T
    assert T % tq == 0
    # (8,128) rule: for T not a multiple of 8, pad in the caller.  The demo
    # (T=8) and the module's block_size=256 both satisfy it.

    # Repack weights: [ Wq * 1/sqrt(hs) | Wk | Wv ], each block (C, H*hs),
    # head-major along columns so it matches torch.cat([head outputs]).
    scale = 1.0 / math.sqrt(float(hs))
    wq = jnp.transpose(wqkv[:, :, 0:hs], (1, 0, 2)).reshape(C, hhs) * scale
    wk = jnp.transpose(wqkv[:, :, hs:2 * hs], (1, 0, 2)).reshape(C, hhs)
    wv = jnp.transpose(wqkv[:, :, 2 * hs:3 * hs], (1, 0, 2)).reshape(C, hhs)
    wqkv_all = jnp.concatenate([wq, wk, wv], axis=-1).astype(jnp.bfloat16)

    x_bf = x.astype(jnp.bfloat16)
    wo_bf = wo.astype(jnp.bfloat16)
    bo2 = bo.reshape(1, C).astype(jnp.float32)

    kernel = functools.partial(_multihead_kernel, n_heads=H, head_size=hs,
                               q_tile=tq)

    return pl.pallas_call(
        kernel,
        out_shape=jax.ShapeDtypeStruct((B, T, C), jnp.float32),
        grid_spec=pltpu.PrefetchScalarGridSpec(
            num_scalar_prefetch=0,
            grid=(B, T // tq),
            in_specs=[
                pl.BlockSpec((1, T, C), lambda b, qi: (b, 0, 0)),     # full seq
                pl.BlockSpec((C, 3 * hhs), lambda b, qi: (0, 0)),
                pl.BlockSpec((hhs, C), lambda b, qi: (0, 0)),
                pl.BlockSpec((1, C), lambda b, qi: (0, 0)),
            ],
            out_specs=pl.BlockSpec((1, tq, C), lambda b, qi: (b, qi, 0)),
            scratch_shapes=[pltpu.VMEM((tq, hhs), jnp.bfloat16)],
        ),
        compiler_params=pltpu.CompilerParams(
            dimension_semantics=("parallel", "parallel")),
    )(x_bf, wqkv_all, wo_bf, bo2)


def multihead_reference(x, wqkv, wo, bo):
    """Pure-JAX f32 reference matching the PyTorch forward (eval mode)."""
    B, T, C = x.shape
    H, _, three_hs = wqkv.shape
    hs = three_hs // 3
    outs = []
    for h in range(H):
        qkv = x @ wqkv[h]                           # (B, T, 3*hs)
        q, k, v = qkv[..., :hs], qkv[..., hs:2 * hs], qkv[..., 2 * hs:]
        wei = jnp.einsum("btd,bsd->bts", q, k) / jnp.sqrt(jnp.float32(hs))
        mask = jnp.tril(jnp.ones((T, T), dtype=bool))
        wei = jnp.where(mask[None], wei, -jnp.inf)
        wei = jax.nn.softmax(wei, axis=-1)
        outs.append(jnp.einsum("bts,bsd->btd", wei, v))
    cat = jnp.concatenate(outs, axis=-1)            # (B, T, H*hs)
    return cat @ wo + bo


if __name__ == "__main__":
    # Small, module-consistent shapes: batch=2, seq=8 (<= block_size), C=384.
    B, T = 2, 8
    key = jax.random.PRNGKey(0)
    kx, kq, kw, kb = jax.random.split(key, 4)

    x = jax.random.normal(kx, (B, T, N_EMBD), dtype=jnp.float32)
    # per-head fused qkv weight, no bias (nn.Linear(n_embd, 3*head_size, bias=False))
    wqkv = 0.02 * jax.random.normal(
        kq, (N_HEADS, N_EMBD, 3 * HEAD_SIZE), dtype=jnp.float32)
    # output projection nn.Linear(n_heads*head_size, n_embd) with bias
    wo = 0.02 * jax.random.normal(
        kw, (N_HEADS * HEAD_SIZE, N_EMBD), dtype=jnp.float32)
    bo = 0.02 * jax.random.normal(kb, (N_EMBD,), dtype=jnp.float32)

    out = multihead_forward(x, wqkv, wo, bo)
    out = jax.block_until_ready(out)

    ref = multihead_reference(x, wqkv, wo, bo)
    assert out.shape == (B, T, N_EMBD)
    # bf16 MXU operands (f32 accumulation) -> compare with bf16-level tolerance.
    assert jnp.allclose(out, ref, atol=2e-2, rtol=2e-2), "mismatch vs reference"

    print("KERNEL_OK")
</pallas_src>

<mosaic_0001>
module attributes {stable_mosaic.version = 11 : i64} {
  func.func @_multihead_kernel(%arg0: i32, %arg1: i32, %arg2: memref<1x8x384xbf16, #tpu.memory_space<vmem>>, %arg3: memref<384x1152xbf16, #tpu.memory_space<vmem>>, %arg4: memref<384x384xbf16, #tpu.memory_space<vmem>>, %arg5: memref<1x384xf32, #tpu.memory_space<vmem>>, %arg6: memref<1x8x384xf32, #tpu.memory_space<vmem>>, %arg7: memref<8x384xbf16, #tpu.memory_space<vmem>>) attributes {dimension_semantics = [#tpu.dimension_semantics<parallel>, #tpu.dimension_semantics<parallel>], iteration_bounds = array<i64: 2, 1>, scalar_prefetch = 0 : i64, scratch_operands = 1 : i64, tpu.core_type = #tpu.core_type<tc>, window_params = [{transform_indices = @transform_0, window_bounds = array<i64: 1, 8, 384>}, {pipeline_mode = #tpu.pipeline_mode<synchronous>, transform_indices = @transform_1, window_bounds = array<i64: 384, 1152>}, {pipeline_mode = #tpu.pipeline_mode<synchronous>, transform_indices = @transform_2, window_bounds = array<i64: 384, 384>}, {pipeline_mode = #tpu.pipeline_mode<synchronous>, transform_indices = @transform_3, window_bounds = array<i64: 1, 384>}, {transform_indices = @transform_4, window_bounds = array<i64: 1, 8, 384>}]} {
    %c8_i32 = arith.constant 8 : i32
    %0 = arith.muli %arg1, %c8_i32 : i32
    %1 = tpu.assume_multiple %0, 8 : i32
    %c0 = arith.constant 0 : index
    %c0_0 = arith.constant 0 : index
    %c0_1 = arith.constant 0 : index
    %2 = vector.load %arg2[%c0, %c0_0, %c0_1] : memref<1x8x384xbf16, #tpu.memory_space<vmem>>, vector<1x8x384xbf16>
    %3 = vector.shape_cast %2 : vector<1x8x384xbf16> to vector<8x384xbf16>
    %c0_2 = arith.constant 0 : index
    %4 = arith.index_cast %1 : i32 to index
    %c0_3 = arith.constant 0 : index
    %5 = vector.load %arg2[%c0_2, %4, %c0_3] : memref<1x8x384xbf16, #tpu.memory_space<vmem>>, vector<1x8x384xbf16>
    %6 = vector.shape_cast %5 : vector<1x8x384xbf16> to vector<8x384xbf16>
    %c0_4 = arith.constant 0 : index
    %c0_5 = arith.constant 0 : index
    %7 = vector.load %arg3[%c0_4, %c0_5] : memref<384x1152xbf16, #tpu.memory_space<vmem>>, vector<384x384xbf16>
    %cst = arith.constant dense<0.000000e+00> : vector<8x384xf32>
    %8 = tpu.matmul %6, %7, %cst {dimension_numbers = #tpu.dot_dimension_numbers<[1], [0], [0], [1], [0, 0, 1, 1], [], []>} : vector<8x384xbf16>, vector<384x384xbf16>, vector<8x384xf32> -> vector<8x384xf32>
    %c0_6 = arith.constant 0 : index
    %c384 = arith.constant 384 : index
    %9 = vector.load %arg3[%c0_6, %c384] : memref<384x1152xbf16, #tpu.memory_space<vmem>>, vector<384x768xbf16>
    %cst_7 = arith.constant dense<0.000000e+00> : vector<8x768xf32>
    %10 = tpu.matmul %3, %9, %cst_7 {dimension_numbers = #tpu.dot_dimension_numbers<[1], [0], [0], [1], [0, 0, 1, 1], [], []>} : vector<8x384xbf16>, vector<384x768xbf16>, vector<8x768xf32> -> vector<8x768xf32>
    %11 = arith.truncf %8 : vector<8x384xf32> to vector<8x384xbf16>
    %12 = vector.extract_strided_slice %10 {offsets = [0, 0], sizes = [8, 384], strides = [1, 1]} : vector<8x768xf32> to vector<8x384xf32>
    %13 = arith.truncf %12 : vector<8x384xf32> to vector<8x384xbf16>
    %14 = vector.extract_strided_slice %10 {offsets = [0, 384], sizes = [8, 384], strides = [1, 1]} : vector<8x768xf32> to vector<8x384xf32>
    %15 = arith.truncf %14 : vector<8x384xf32> to vector<8x384xbf16>
    %16 = tpu.iota {dimensions = array<i32: 0>} : vector<8x8xi32>
    %17 = vector.broadcast %1 : i32 to vector<8x8xi32>
    %18 = arith.addi %17, %16 : vector<8x8xi32>
    %19 = tpu.iota {dimensions = array<i32: 1>} : vector<8x8xi32>
    %20 = arith.cmpi sle, %19, %18 : vector<8x8xi32>
    %cst_8 = arith.constant 0.000000e+00 : f32
    %cst_9 = arith.constant -1.000000e+30 : f32
    %21 = vector.broadcast %cst_8 : f32 to vector<8x8xf32>
    %22 = vector.broadcast %cst_9 : f32 to vector<8x8xf32>
    %23 = arith.select %20, %21, %22 : vector<8x8xi1>, vector<8x8xf32>
    %24 = vector.extract_strided_slice %11 {offsets = [0, 0], sizes = [8, 64], strides = [1, 1]} : vector<8x384xbf16> to vector<8x64xbf16>
    %25 = vector.extract_strided_slice %13 {offsets = [0, 0], sizes = [8, 64], strides = [1, 1]} : vector<8x384xbf16> to vector<8x64xbf16>
    %26 = vector.extract_strided_slice %15 {offsets = [0, 0], sizes = [8, 64], strides = [1, 1]} : vector<8x384xbf16> to vector<8x64xbf16>
    %27 = tpu.transpose %25, [1, 0] : vector<8x64xbf16> -> vector<64x8xbf16>
    %cst_10 = arith.constant dense<0.000000e+00> : vector<8x8xf32>
    %28 = tpu.matmul %24, %27, %cst_10 {dimension_numbers = #tpu.dot_dimension_numbers<[1], [0], [0], [1], [0, 0, 1, 1], [], []>} : vector<8x64xbf16>, vector<64x8xbf16>, vector<8x8xf32> -> vector<8x8xf32>
    %29 = arith.addf %28, %23 : vector<8x8xf32>
    %cst_11 = arith.constant dense<0xFF800000> : vector<8xf32>
    %30 = vector.multi_reduction <maximumf>, %29, %cst_11 [1] : vector<8x8xf32> to vector<8xf32>
    %31 = vector.shape_cast %30 : vector<8xf32> to vector<8x1xf32>
    %32 = vector.broadcast %31 : vector<8x1xf32> to vector<8x8xf32>
    %33 = arith.subf %29, %32 : vector<8x8xf32>
    %34 = math.exp %33 : vector<8x8xf32>
    %cst_12 = arith.constant dense<0.000000e+00> : vector<8xf32>
    %35 = vector.multi_reduction <add>, %34, %cst_12 [1] : vector<8x8xf32> to vector<8xf32>
    %36 = vector.shape_cast %35 : vector<8xf32> to vector<8x1xf32>
    %37 = arith.truncf %34 : vector<8x8xf32> to vector<8x8xbf16>
    %cst_13 = arith.constant dense<0.000000e+00> : vector<8x64xf32>
    %38 = tpu.matmul %37, %26, %cst_13 {dimension_numbers = #tpu.dot_dimension_numbers<[1], [0], [0], [1], [0, 0, 1, 1], [], []>} : vector<8x8xbf16>, vector<8x64xbf16>, vector<8x64xf32> -> vector<8x64xf32>
    %39 = tpu.reciprocal %36 {approx = true} : vector<8x1xf32> -> vector<8x1xf32>
    %40 = vector.broadcast %39 : vector<8x1xf32> to vector<8x64xf32>
    %41 = arith.mulf %38, %40 : vector<8x64xf32>
    %42 = vector.extract_strided_slice %11 {offsets = [0, 64], sizes = [8, 64], strides = [1, 1]} : vector<8x384xbf16> to vector<8x64xbf16>
    %43 = vector.extract_strided_slice %13 {offsets = [0, 64], sizes = [8, 64], strides = [1, 1]} : vector<8x384xbf16> to vector<8x64xbf16>
    %44 = vector.extract_strided_slice %15 {offsets = [0, 64], sizes = [8, 64], strides = [1, 1]} : vector<8x384xbf16> to vector<8x64xbf16>
    %45 = tpu.transpose %43, [1, 0] : vector<8x64xbf16> -> vector<64x8xbf16>
    %cst_14 = arith.constant dense<0.000000e+00> : vector<8x8xf32>
    %46 = tpu.matmul %42, %45, %cst_14 {dimension_numbers = #tpu.dot_dimension_numbers<[1], [0], [0], [1], [0, 0, 1, 1], [], []>} : vector<8x64xbf16>, vector<64x8xbf16>, vector<8x8xf32> -> vector<8x8xf32>
    %47 = arith.addf %46, %23 : vector<8x8xf32>
    %cst_15 = arith.constant dense<0xFF800000> : vector<8xf32>
    %48 = vector.multi_reduction <maximumf>, %47, %cst_15 [1] : vector<8x8xf32> to vector<8xf32>
    %49 = vector.shape_cast %48 : vector<8xf32> to vector<8x1xf32>
    %50 = vector.broadcast %49 : vector<8x1xf32> to vector<8x8xf32>
    %51 = arith.subf %47, %50 : vector<8x8xf32>
    %52 = math.exp %51 : vector<8x8xf32>
    %cst_16 = arith.constant dense<0.000000e+00> : vector<8xf32>
    %53 = vector.multi_reduction <add>, %52, %cst_16 [1] : vector<8x8xf32> to vector<8xf32>
    %54 = vector.shape_cast %53 : vector<8xf32> to vector<8x1xf32>
    %55 = arith.truncf %52 : vector<8x8xf32> to vector<8x8xbf16>
    %cst_17 = arith.constant dense<0.000000e+00> : vector<8x64xf32>
    %56 = tpu.matmul %55, %44, %cst_17 {dimension_numbers = #tpu.dot_dimension_numbers<[1], [0], [0], [1], [0, 0, 1, 1], [], []>} : vector<8x8xbf16>, vector<8x64xbf16>, vector<8x64xf32> -> vector<8x64xf32>
    %57 = tpu.reciprocal %54 {approx = true} : vector<8x1xf32> -> vector<8x1xf32>
    %58 = vector.broadcast %57 : vector<8x1xf32> to vector<8x64xf32>
    %59 = arith.mulf %56, %58 : vector<8x64xf32>
    %60 = tpu.concatenate %41, %59 in 1 : vector<8x64xf32>, vector<8x64xf32> -> vector<8x128xf32>
    %61 = arith.truncf %60 : vector<8x128xf32> to vector<8x128xbf16>
    %c0_18 = arith.constant 0 : index
    %c0_19 = arith.constant 0 : index
    %62 = vector.load %arg7[%c0_18, %c0_19] : memref<8x384xbf16, #tpu.memory_space<vmem>>, vector<8x128xbf16>
    tpu.vector_store %arg7[%c0_18, %c0_19], %61 {strides = array<i32>} : memref<8x384xbf16, #tpu.memory_space<vmem>>, vector<8x128xbf16>,
    %63 = vector.extract_strided_slice %11 {offsets = [0, 128], sizes = [8, 64], strides = [1, 1]} : vector<8x384xbf16> to vector<8x64xbf16>
    %64 = vector.extract_strided_slice %13 {offsets = [0, 128], sizes = [8, 64], strides = [1, 1]} : vector<8x384xbf16> to vector<8x64xbf16>
    %65 = vector.extract_strided_slice %15 {offsets = [0, 128], sizes = [8, 64], strides = [1, 1]} : vector<8x384xbf16> to vector<8x64xbf16>
    %66 = tpu.transpose %64, [1, 0] : vector<8x64xbf16> -> vector<64x8xbf16>
    %cst_20 = arith.constant dense<0.000000e+00> : vector<8x8xf32>
    %67 = tpu.matmul %63, %66, %cst_20 {dimension_numbers = #tpu.dot_dimension_numbers<[1], [0], [0], [1], [0, 0, 1, 1], [], []>} : vector<8x64xbf16>, vector<64x8xbf16>, vector<8x8xf32> -> vector<8x8xf32>
    %68 = arith.addf %67, %23 : vector<8x8xf32>
    %cst_21 = arith.constant dense<0xFF800000> : vector<8xf32>
    %69 = vector.multi_reduction <maximumf>, %68, %cst_21 [1] : vector<8x8xf32> to vector<8xf32>
    %70 = vector.shape_cast %69 : vector<8xf32> to vector<8x1xf32>
    %71 = vector.broadcast %70 : vector<8x1xf32> to vector<8x8xf32>
    %72 = arith.subf %68, %71 : vector<8x8xf32>
    %73 = math.exp %72 : vector<8x8xf32>
    %cst_22 = arith.constant dense<0.000000e+00> : vector<8xf32>
    %74 = vector.multi_reduction <add>, %73, %cst_22 [1] : vector<8x8xf32> to vector<8xf32>
    %75 = vector.shape_cast %74 : vector<8xf32> to vector<8x1xf32>
    %76 = arith.truncf %73 : vector<8x8xf32> to vector<8x8xbf16>
    %cst_23 = arith.constant dense<0.000000e+00> : vector<8x64xf32>
    %77 = tpu.matmul %76, %65, %cst_23 {dimension_numbers = #tpu.dot_dimension_numbers<[1], [0], [0], [1], [0, 0, 1, 1], [], []>} : vector<8x8xbf16>, vector<8x64xbf16>, vector<8x64xf32> -> vector<8x64xf32>
    %78 = tpu.reciprocal %75 {approx = true} : vector<8x1xf32> -> vector<8x1xf32>
    %79 = vector.broadcast %78 : vector<8x1xf32> to vector<8x64xf32>
    %80 = arith.mulf %77, %79 : vector<8x64xf32>
    %81 = vector.extract_strided_slice %11 {offsets = [0, 192], sizes = [8, 64], strides = [1, 1]} : vector<8x384xbf16> to vector<8x64xbf16>
    %82 = vector.extract_strided_slice %13 {offsets = [0, 192], sizes = [8, 64], strides = [1, 1]} : vector<8x384xbf16> to vector<8x64xbf16>
    %83 = vector.extract_strided_slice %15 {offsets = [0, 192], sizes = [8, 64], strides = [1, 1]} : vector<8x384xbf16> to vector<8x64xbf16>
    %84 = tpu.transpose %82, [1, 0] : vector<8x64xbf16> -> vector<64x8xbf16>
    %cst_24 = arith.constant dense<0.000000e+00> : vector<8x8xf32>
    %85 = tpu.matmul %81, %84, %cst_24 {dimension_numbers = #tpu.dot_dimension_numbers<[1], [0], [0], [1], [0, 0, 1, 1], [], []>} : vector<8x64xbf16>, vector<64x8xbf16>, vector<8x8xf32> -> vector<8x8xf32>
    %86 = arith.addf %85, %23 : vector<8x8xf32>
    %cst_25 = arith.constant dense<0xFF800000> : vector<8xf32>
    %87 = vector.multi_reduction <maximumf>, %86, %cst_25 [1] : vector<8x8xf32> to vector<8xf32>
    %88 = vector.shape_cast %87 : vector<8xf32> to vector<8x1xf32>
    %89 = vector.broadcast %88 : vector<8x1xf32> to vector<8x8xf32>
    %90 = arith.subf %86, %89 : vector<8x8xf32>
    %91 = math.exp %90 : vector<8x8xf32>
    %cst_26 = arith.constant dense<0.000000e+00> : vector<8xf32>
    %92 = vector.multi_reduction <add>, %91, %cst_26 [1] : vector<8x8xf32> to vector<8xf32>
    %93 = vector.shape_cast %92 : vector<8xf32> to vector<8x1xf32>
    %94 = arith.truncf %91 : vector<8x8xf32> to vector<8x8xbf16>
    %cst_27 = arith.constant dense<0.000000e+00> : vector<8x64xf32>
    %95 = tpu.matmul %94, %83, %cst_27 {dimension_numbers = #tpu.dot_dimension_numbers<[1], [0], [0], [1], [0, 0, 1, 1], [], []>} : vector<8x8xbf16>, vector<8x64xbf16>, vector<8x64xf32> -> vector<8x64xf32>
    %96 = tpu.reciprocal %93 {approx = true} : vector<8x1xf32> -> vector<8x1xf32>
    %97 = vector.broadcast %96 : vector<8x1xf32> to vector<8x64xf32>
    %98 = arith.mulf %95, %97 : vector<8x64xf32>
    %99 = tpu.concatenate %80, %98 in 1 : vector<8x64xf32>, vector<8x64xf32> -> vector<8x128xf32>
    %100 = arith.truncf %99 : vector<8x128xf32> to vector<8x128xbf16>
    %c0_28 = arith.constant 0 : index
    %c128 = arith.constant 128 : index
    %101 = vector.load %arg7[%c0_28, %c128] : memref<8x384xbf16, #tpu.memory_space<vmem>>, vector<8x128xbf16>
    tpu.vector_store %arg7[%c0_28, %c128], %100 {strides = array<i32>} : memref<8x384xbf16, #tpu.memory_space<vmem>>, vector<8x128xbf16>,
    %102 = vector.extract_strided_slice %11 {offsets = [0, 256], sizes = [8, 64], strides = [1, 1]} : vector<8x384xbf16> to vector<8x64xbf16>
    %103 = vector.extract_strided_slice %13 {offsets = [0, 256], sizes = [8, 64], strides = [1, 1]} : vector<8x384xbf16> to vector<8x64xbf16>
    %104 = vector.extract_strided_slice %15 {offsets = [0, 256], sizes = [8, 64], strides = [1, 1]} : vector<8x384xbf16> to vector<8x64xbf16>
    %105 = tpu.transpose %103, [1, 0] : vector<8x64xbf16> -> vector<64x8xbf16>
    %cst_29 = arith.constant dense<0.000000e+00> : vector<8x8xf32>
    %106 = tpu.matmul %102, %105, %cst_29 {dimension_numbers = #tpu.dot_dimension_numbers<[1], [0], [0], [1], [0, 0, 1, 1], [], []>} : vector<8x64xbf16>, vector<64x8xbf16>, vector<8x8xf32> -> vector<8x8xf32>
    %107 = arith.addf %106, %23 : vector<8x8xf32>
    %cst_30 = arith.constant dense<0xFF800000> : vector<8xf32>
    %108 = vector.multi_reduction <maximumf>, %107, %cst_30 [1] : vector<8x8xf32> to vector<8xf32>
    %109 = vector.shape_cast %108 : vector<8xf32> to vector<8x1xf32>
    %110 = vector.broadcast %109 : vector<8x1xf32> to vector<8x8xf32>
    %111 = arith.subf %107, %110 : vector<8x8xf32>
    %112 = math.exp %111 : vector<8x8xf32>
    %cst_31 = arith.constant dense<0.000000e+00> : vector<8xf32>
    %113 = vector.multi_reduction <add>, %112, %cst_31 [1] : vector<8x8xf32> to vector<8xf32>
    %114 = vector.shape_cast %113 : vector<8xf32> to vector<8x1xf32>
    %115 = arith.truncf %112 : vector<8x8xf32> to vector<8x8xbf16>
    %cst_32 = arith.constant dense<0.000000e+00> : vector<8x64xf32>
    %116 = tpu.matmul %115, %104, %cst_32 {dimension_numbers = #tpu.dot_dimension_numbers<[1], [0], [0], [1], [0, 0, 1, 1], [], []>} : vector<8x8xbf16>, vector<8x64xbf16>, vector<8x64xf32> -> vector<8x64xf32>
    %117 = tpu.reciprocal %114 {approx = true} : vector<8x1xf32> -> vector<8x1xf32>
    %118 = vector.broadcast %117 : vector<8x1xf32> to vector<8x64xf32>
    %119 = arith.mulf %116, %118 : vector<8x64xf32>
    %120 = vector.extract_strided_slice %11 {offsets = [0, 320], sizes = [8, 64], strides = [1, 1]} : vector<8x384xbf16> to vector<8x64xbf16>
    %121 = vector.extract_strided_slice %13 {offsets = [0, 320], sizes = [8, 64], strides = [1, 1]} : vector<8x384xbf16> to vector<8x64xbf16>
    %122 = vector.extract_strided_slice %15 {offsets = [0, 320], sizes = [8, 64], strides = [1, 1]} : vector<8x384xbf16> to vector<8x64xbf16>
    %123 = tpu.transpose %121, [1, 0] : vector<8x64xbf16> -> vector<64x8xbf16>
    %cst_33 = arith.constant dense<0.000000e+00> : vector<8x8xf32>
    %124 = tpu.matmul %120, %123, %cst_33 {dimension_numbers = #tpu.dot_dimension_numbers<[1], [0], [0], [1], [0, 0, 1, 1], [], []>} : vector<8x64xbf16>, vector<64x8xbf16>, vector<8x8xf32> -> vector<8x8xf32>
    %125 = arith.addf %124, %23 : vector<8x8xf32>
    %cst_34 = arith.constant dense<0xFF800000> : vector<8xf32>
    %126 = vector.multi_reduction <maximumf>, %125, %cst_34 [1] : vector<8x8xf32> to vector<8xf32>
    %127 = vector.shape_cast %126 : vector<8xf32> to vector<8x1xf32>
    %128 = vector.broadcast %127 : vector<8x1xf32> to vector<8x8xf32>
    %129 = arith.subf %125, %128 : vector<8x8xf32>
    %130 = math.exp %129 : vector<8x8xf32>
    %cst_35 = arith.constant dense<0.000000e+00> : vector<8xf32>
    %131 = vector.multi_reduction <add>, %130, %cst_35 [1] : vector<8x8xf32> to vector<8xf32>
    %132 = vector.shape_cast %131 : vector<8xf32> to vector<8x1xf32>
    %133 = arith.truncf %130 : vector<8x8xf32> to vector<8x8xbf16>
    %cst_36 = arith.constant dense<0.000000e+00> : vector<8x64xf32>
    %134 = tpu.matmul %133, %122, %cst_36 {dimension_numbers = #tpu.dot_dimension_numbers<[1], [0], [0], [1], [0, 0, 1, 1], [], []>} : vector<8x8xbf16>, vector<8x64xbf16>, vector<8x64xf32> -> vector<8x64xf32>
    %135 = tpu.reciprocal %132 {approx = true} : vector<8x1xf32> -> vector<8x1xf32>
    %136 = vector.broadcast %135 : vector<8x1xf32> to vector<8x64xf32>
    %137 = arith.mulf %134, %136 : vector<8x64xf32>
    %138 = tpu.concatenate %119, %137 in 1 : vector<8x64xf32>, vector<8x64xf32> -> vector<8x128xf32>
    %139 = arith.truncf %138 : vector<8x128xf32> to vector<8x128xbf16>
    %c0_37 = arith.constant 0 : index
    %c256 = arith.constant 256 : index
    %140 = vector.load %arg7[%c0_37, %c256] : memref<8x384xbf16, #tpu.memory_space<vmem>>, vector<8x128xbf16>
    tpu.vector_store %arg7[%c0_37, %c256], %139 {strides = array<i32>} : memref<8x384xbf16, #tpu.memory_space<vmem>>, vector<8x128xbf16>,
    %c0_38 = arith.constant 0 : index
    %c0_39 = arith.constant 0 : index
    %141 = vector.load %arg7[%c0_38, %c0_39] : memref<8x384xbf16, #tpu.memory_space<vmem>>, vector<8x384xbf16>
    %c0_40 = arith.constant 0 : index
    %c0_41 = arith.constant 0 : index
    %142 = vector.load %arg4[%c0_40, %c0_41] : memref<384x384xbf16, #tpu.memory_space<vmem>>, vector<384x384xbf16>
    %cst_42 = arith.constant dense<0.000000e+00> : vector<8x384xf32>
    %143 = tpu.matmul %141, %142, %cst_42 {dimension_numbers = #tpu.dot_dimension_numbers<[1], [0], [0], [1], [0, 0, 1, 1], [], []>} : vector<8x384xbf16>, vector<384x384xbf16>, vector<8x384xf32> -> vector<8x384xf32>
    %c0_43 = arith.constant 0 : index
    %c0_44 = arith.constant 0 : index
    %144 = vector.load %arg5[%c0_43, %c0_44] : memref<1x384xf32, #tpu.memory_space<vmem>>, vector<1x384xf32>
    %145 = vector.shape_cast %144 : vector<1x384xf32> to vector<384xf32>
    %146 = vector.shape_cast %145 : vector<384xf32> to vector<1x384xf32>
    %147 = vector.broadcast %146 : vector<1x384xf32> to vector<8x384xf32>
    %148 = arith.addf %143, %147 : vector<8x384xf32>
    %c0_45 = arith.constant 0 : index
    %c0_46 = arith.constant 0 : index
    %c0_47 = arith.constant 0 : index
    %149 = vector.load %arg6[%c0_45, %c0_46, %c0_47] : memref<1x8x384xf32, #tpu.memory_space<vmem>>, vector<1x8x384xf32>
    %150 = vector.shape_cast %149 : vector<1x8x384xf32> to vector<8x384xf32>
    %151 = vector.shape_cast %148 : vector<8x384xf32> to vector<1x8x384xf32>
    tpu.vector_store %arg6[%c0_45, %c0_46, %c0_47], %151 {strides = array<i32>} : memref<1x8x384xf32, #tpu.memory_space<vmem>>, vector<1x8x384xf32>,
    return
  }
  func.func @transform_0(%arg0: i32, %arg1: i32) -> (i32, i32, i32) {
    %c0_i32 = arith.constant 0 : i32
    %c0_i32_0 = arith.constant 0 : i32
    %c0_i32_1 = arith.constant 0 : i32
    return %arg0, %c0_i32, %c0_i32_0 : i32, i32, i32
  }
  func.func @transform_1(%arg0: i32, %arg1: i32) -> (i32, i32) {
    %c0_i32 = arith.constant 0 : i32
    %c0_i32_0 = arith.constant 0 : i32
    %c0_i32_1 = arith.constant 0 : i32
    return %c0_i32, %c0_i32_0 : i32, i32
  }
  func.func @transform_2(%arg0: i32, %arg1: i32) -> (i32, i32) {
    %c0_i32 = arith.constant 0 : i32
    %c0_i32_0 = arith.constant 0 : i32
    %c0_i32_1 = arith.constant 0 : i32
    return %c0_i32, %c0_i32_0 : i32, i32
  }
  func.func @transform_3(%arg0: i32, %arg1: i32) -> (i32, i32) {
    %c0_i32 = arith.constant 0 : i32
    %c0_i32_0 = arith.constant 0 : i32
    %c0_i32_1 = arith.constant 0 : i32
    return %c0_i32, %c0_i32_0 : i32, i32
  }
  func.func @transform_4(%arg0: i32, %arg1: i32) -> (i32, i32, i32) {
    %c0_i32 = arith.constant 0 : i32
    %c0_i32_0 = arith.constant 0 : i32
    return %arg0, %arg1, %c0_i32 : i32, i32, i32
  }
}

</mosaic_0001>

<bundles_post_ra>
// kernel: tpu_custom_call.1
= control target key start
LH: loop header
LB: loop body
LE: loop exit
PB: predicated region body
PF: predicated region fallthrough
CT: control target
= control target key end

     0   :  { %9 = vsyncpa [#allocation4], 0  ;;  %s5270_s0 = inlined_call_operand.hbm [shape: bf16[2,8,384], index: 0, kind: input, shape index: {}]   ;;  %s5271_s1 = inlined_call_operand.hbm [shape: bf16[384,1152], index: 1, kind: input, shape index: {}]   ;;  %s5272_s2 = inlined_call_operand.hbm [shape: bf16[384,384], index: 2, kind: input, shape index: {}]   ;;  %s5273_s3 = inlined_call_operand.vmem [shape: f32[1,384], index: 3, kind: input, shape index: {}]   ;;  %s5274_s4 = inlined_call_operand.hbm [shape: f32[2,8,384], index: 4, kind: output, shape index: {}]  }
   0x1   :  { %11 = vsyncpa [#allocation4 + $0x1], 0 }
   0x2   :  { %12 = vsyncpa [#allocation7], 0 }
   0x3   :  { %13 = vsyncpa [#allocation5], 0 }
   0x4   :  { %15 = vsyncpa [#allocation5 + $0x1], 0  ;;  %s4823_s15 = smov 0   ;;  %s4825_s16 = smov 0  }
   0x5   :  { %s4827_s17 = smov 0   ;;  %s4829_s18 = smov 0  }
   0x6   :  { %s4831_s19 = smov 0   ;;  %s4833_s20 = smov 0  }
   0x7 LB: > { %s3528_s21 = sadd.s32 4294967295, %s4783_s20   ;;  %s3529_s22 = sadd.s32 4294967294, %s4783_s20   ;;  %s4783_s20 = sphi %s4833_s20, %s21_s20   ;;  %s4779_s19 = sphi %s4831_s19, %s5296_s19   ;;  %s4775_s18 = sphi %s4829_s18, %s5295_s18   ;;  %s4771_s17 = sphi %s4827_s17, %s5294_s17   ;;  %s4767_s16 = sphi %s4825_s16, %s5293_s16   ;;  %s4763_s15 = sphi %s4823_s15, %s5292_s15  }
   0x8   : > { %p53_p0 = scmp.ne.s32.totalorder %s4767_s16, %s4763_s15  ;;  %p4857_p1 = scmp.eq.s32.totalorder %s3528_s21, 0 }
   0x9   : > { %p4861_p2 = scmp.eq.s32.totalorder %s3528_s21, 1  ;;  %p148_p3 = scmp.eq.s32.totalorder %s3529_s22, 1 }
   0xa   : > { %s5279_s23 = scalar_select %p4857_p1, 1, 0 }
   0xb   : > { %p4867_p4 = por %p4857_p1, %p53_p0  ;;  %p3530_p5 = scmp.ge.s32.totalorder %s4783_s20, 1 }
   0xc   : > { %p4872_p6 = por %p148_p3, %p53_p0  ;;  %p155_p7 = scmp.lt.s32.totalorder %s4783_s20, 3 }
   0xd   : > { %s5281_s25 = scalar_select %p4867_p4, 1, 0 }
   0xe   : > { %s5282_s26 = scalar_select %p4872_p6, 1, 0 }
   0xf   : > { %p4877_p8 = pnand %p3530_p5, %p155_p7  ;;  %s4785_s28 = smov [#allocation6]  }
  0x10   : > { %s167_s29 = sshll.u32 %s4785_s28, 4  ;;  %s4786_s5 = smov [#allocation8]   ;;  %s4881_s29 = int_to_ptr.vmem [resolvable:$true] %s167_s29 }
  0x11   : > { %p4087_p9 = pneg %p4877_p8  ;;  %s180_s6 = sshll.u32 %s4786_s5, 4  ;;  %s4892_s6 = int_to_ptr.vmem [resolvable:$true] %s180_s6 }
  0x12   : > { %s4611_s9 = scalar_lea.hbm %s5271_s1, 27648 }
  0x13   : > { %p4888_p11 = pnand %p4087_p9, %p4857_p1  ;;  %p4612_p12 = scmp.ne.s32.totalorder %s5271_s1, %s4611_s9 }
  0x14   : > { %p4618_p5 = scmp.lt.u32.totalorder %s4611_s9, %s5271_s1 }
  0x15   : > { %p4613_p13 = pneg %p4888_p11 }
  0x17   : > { %p4614_p0 = pnand %p4613_p13, %p4612_p12 }
  0x19   : > { %p4615_p3 = pneg %p4614_p0 }
  0x1b   : > { %p4620_p7 = pnand %p4618_p5, %p4615_p3 }
  0x1d   : > { %4623 = shalt.err (!%p4620_p7)
}
  0x1e   : > { %s4624_s14 = scalar_lea.vmem %s4881_s29, 27648  ;;  %p4632_p1 = scmp.lt.s32.totalorder %s4881_s29, %s4881_s29 }
  0x1f   : > { %p4625_p9 = scmp.ne.s32.totalorder %s4881_s29, %s4624_s14  ;;  %p4633_p12 = scmp.lt.s32.totalorder %s4624_s14, %s4624_s14 }
  0x21   : > { %p4627_p10 = pnand %p4625_p9, %p4613_p13  ;;  %p4634_p0 = por %p4633_p12, %p4632_p1 }
  0x23   : > { %p4628_p6 = pneg %p4627_p10 }
  0x25   : > { %p4635_p4 = pnand %p4634_p0, %p4628_p6 }
  0x27   : > { %4638 = shalt.err (!%p4635_p4)
}
  0x28   : > { %s4787_s21 = smov 576   ;;  %s4788_s22 = smov 36  }
  0x29   : > { %4090 = dma.hbm_to_vmem [thread:$0]  (!%p4888_p11), %s5271_s1, 27648, %s4881_s29, [#allocation7], %s4787_s21, %s4787_s21, %s4788_s22  }
  0x2a   : > { %s4639_s9 = scalar_lea.hbm %s5272_s2, 9216 }
  0x2b   : > { %p4640_p1 = scmp.ne.s32.totalorder %s5272_s2, %s4639_s9  ;;  %p4646_p10 = scmp.lt.u32.totalorder %s4639_s9, %s5272_s2 }
  0x2d   : > { %p4642_p4 = pnand %p4640_p1, %p4613_p13 }
  0x2f   : > { %p4643_p6 = pneg %p4642_p4 }
  0x31   : > { %p4648_p3 = pnand %p4646_p10, %p4643_p6 }
  0x33   : > { %4651 = shalt.err (!%p4648_p3)
}
  0x34   : > { %s4652_s29 = scalar_lea.vmem %s4892_s6, 9216  ;;  %p4660_p12 = scmp.lt.s32.totalorder %s4892_s6, %s4892_s6 }
  0x35   : > { %p4653_p5 = scmp.ne.s32.totalorder %s4892_s6, %s4652_s29  ;;  %p4661_p0 = scmp.lt.s32.totalorder %s4652_s29, %s4652_s29 }
  0x37   : > { %p4655_p7 = pnand %p4653_p5, %p4613_p13  ;;  %p4662_p1 = por %p4661_p0, %p4660_p12 }
  0x39   : > { %p4656_p9 = pneg %p4655_p7 }
  0x3b   : > { %p4663_p4 = pnand %p4662_p1, %p4656_p9 }
  0x3d   : > { %4666 = shalt.err (!%p4663_p4)
}
  0x3e   : > { %s4789_s14 = smov 192   ;;  %s4790_s21 = smov 12  }
  0x3f   : > { %4093 = dma.hbm_to_vmem [thread:$0]  (!%p4888_p11), %s5272_s2, 9216, %s4892_s6, [#allocation7], %s4789_s14, %s4789_s14, %s4790_s21  }
  0x40   : > { %s33_s5 = sadd.s32 1, %s4779_s19  ;;  %s40_s7 = sadd.s32 1, %s4771_s17 }
  0x41   : > { %p35_p13 = scmp.ge.s32.totalorder %s33_s5, 2  ;;  %p47_p6 = scmp.ne.s32.totalorder %s4771_s17, %s4767_s16 }
  0x42   : > { %p48_p10 = scmp.eq.s32.totalorder %s4783_s20, 0  ;;  %p4104_p3 = scmp.lt.s32.totalorder %s4783_s20, 2 }
  0x43   : > { %s5298_s5 = smov (%p35_p13, %s33_s5), 0  ;;  %p4956_p7 = por %p4861_p2, %p47_p6 }
  0x44   : > { %p49_p5 = por %p48_p10, %p47_p6  ;;  %s37_s30 = ssub.s32 %s4779_s19, %s5298_s5 }
  0x45   : > { %s5285_s8 = scalar_select %p4956_p7, 1, 0 }
  0x46   : > { %s197_s9 = sand.u32 1, %s4771_s17   ;;  %p38_p9 = scmp.eq.s32.totalorder %s37_s30, 0 }
  0x47   : > { %s4070_s6 = smul.u32 12, %s197_s9  ;;  %p4963_p11 = pnand %p4104_p3, %p49_p5 }
  0x48   : > { %s4968_s11 = scalar_select %p38_p9, %s4771_s17, %s40_s7  }
  0x49   : > { %s4071_s12 = smul.u32 192, %s4779_s19  ;;  %s201_s13 = scalar_lea.vmem [#allocation3], %s4070_s6 }
  0x4a   : > { %s209_s29 = sshll.u32 %s201_s13, 4  ;;  %s198_s22 = scalar_lea.sflag [#allocation4], %s197_s9  ;;  %s4976_s29 = int_to_ptr.vmem [resolvable:$true] %s209_s29 }
  0x4b   : > { %s4974_s21 = scalar_lea.hbm %s5270_s0, %s4071_s12  ;;  %p4669_p12 = pneg %p4963_p11 }
  0x4c   : > { %s4667_s28 = scalar_lea.hbm %s4974_s21, 192  ;;  %s4672_s6 = scalar_lea.hbm %s5270_s0, 384 }
  0x4d   : > { %p4668_p2 = scmp.ne.s32.totalorder %s4974_s21, %s4667_s28  ;;  %p4673_p4 = scmp.lt.u32.totalorder %s4974_s21, %s5270_s0 }
  0x4e   : > { %p4674_p13 = scmp.lt.u32.totalorder %s4672_s6, %s4667_s28  ;;  %p4676_p10 = scmp.lt.u32.totalorder %s4667_s28, %s4974_s21 }
  0x4f   : > { %p4670_p0 = pnand %p4669_p12, %p4668_p2 }
  0x50   : > { %p4675_p6 = por %p4674_p13, %p4673_p4 }
  0x51   : > { %p4671_p1 = pneg %p4670_p0 }
  0x52   : > { %p4677_p3 = por %p4676_p10, %p4675_p6 }
  0x54   : > { %p4678_p5 = pnand %p4677_p3, %p4671_p1 }
  0x56   : > { %4681 = shalt.err (!%p4678_p5)
}
  0x57   : > { %s4682_s9 = scalar_lea.vmem %s4976_s29, 192  ;;  %s4791_s24 = smov [#allocation3]  }
  0x58   : > { %p4683_p9 = scmp.ne.s32.totalorder %s4976_s29, %s4682_s9  ;;  %s4687_s14 = sshll.u32 %s4791_s24, 4  ;;  %s4688_s14 = int_to_ptr.vmem [resolvable:$false] %s4687_s14 }
  0x59   : > { %s4689_s7 = scalar_lea.vmem %s4688_s14, 384  ;;  %p4690_p7 = scmp.lt.s32.totalorder %s4976_s29, %s4688_s14 }
  0x5a   : > { %p4685_p2 = pnand %p4683_p9, %p4669_p12  ;;  %p4691_p4 = scmp.lt.s32.totalorder %s4689_s7, %s4682_s9 }
  0x5c   : > { %p4686_p0 = pneg %p4685_p2  ;;  %p4692_p13 = por %p4691_p4, %p4690_p7 }
  0x5e   : > { %p4693_p6 = pnand %p4692_p13, %p4686_p0 }
  0x60   : > { %4696 = shalt.err (!%p4693_p6)
}
  0x61   : > { %4097 = dma.hbm_to_vmem [thread:$0]  (!%p4963_p11), %s4974_s21, 192, %s4976_s29, %s198_s22  }
  0x62   : > { %218 = sbr.rel (%p4877_p8) target bundleno = 2704 (0xa90), region = 36  ;;  %s5006_s28 = sand.u32 (!%p4877_p8), 1, %s4767_s16  }
  0x63   : > { %s4072_s30 = smul.u32 (!%p4877_p8), 12, %s5006_s28  ;;  %s221_s6 = scalar_lea.sflag (!%p4877_p8), [#allocation4], %s5006_s28 }
  0x64   : > { %p5287_p7 = scmp.ne.s32.totalorder (!%p4877_p8), %s5281_s25, 0 }
  0x65   : > { %s5010_s12 = scalar_lea.vmem (!%p4877_p8), [#allocation3], %s4072_s30 }
  0x69   : > { %4750 = dma.done.wait (%p5287_p7), %s221_s6, 192  }
  0x6a   : > { %4752 = vsyncadd (%p5287_p7), %s221_s6, 4294967104  ;;  %p5288_p11 = scmp.ne.s32.totalorder %s5279_s23, 0 }
  0x6c   : > { %4754 = dma.done.wait (%p5288_p11), [#allocation7], 36864  }
  0x6d   : > { %4756 = vsyncadd (%p5288_p11), [#allocation7], 4294930432  ;;  %v4172_v0 = vld [vmem:[#allocation6 + $0x248] ss:$36 sps:$4 sm:$0xff]   ;;  %v4174_v2 = vld [vmem:[#allocation6 + $0x290] ss:$36 sps:$4 sm:$0xff]  }
  0x6e   : > { %v4173_v1 = vld [vmem:[#allocation6 + $0x8] ss:$36 sps:$4 sm:$0xff]   ;;  %3850 = vmatprep.subr.bf16.mxu1 %v4172_v0  ;;  %v4175_v3 = vld [vmem:[#allocation6 + $0x50] ss:$36 sps:$4 sm:$0xff]   ;;  %v4176_v4 = vld [vmem:[#allocation6 + $0x2d8] ss:$36 sps:$4 sm:$0xff]  }
  0x6f   : > { %3851 = vmatpush3.bf16.msra.mxu1 %v4173_v1  ;;  %v4177_v5 = vld [vmem:[#allocation6 + $0x98] ss:$36 sps:$4 sm:$0xff]   ;;  %v4178_v6 = vld [vmem:[#allocation6 + $0x320] ss:$36 sps:$4 sm:$0xff]   ;;  %v4180_v8 = vld [vmem:[#allocation6 + $0x368] ss:$36 sps:$4 sm:$0xff]  }
  0x70   : > { %3852 = vmatprep.subr.bf16.mxu1 %v4174_v2  ;;  %v4179_v7 = vld [vmem:[#allocation6 + $0xe0] ss:$36 sps:$4 sm:$0xff]   ;;  %v4181_v9 = vld [vmem:[#allocation6 + $0x128] ss:$36 sps:$4 sm:$0xff]   ;;  %v4182_v10 = vld [vmem:[#allocation6 + $0x3b0] ss:$36 sps:$4 sm:$0xff]  }
  0x71   : > { %v266_v11 = vld [vmem:[%s5010_s12] sm:$0xff]  ;;  %v4194_v15 = vld [vmem:[#allocation6] ss:$36 sps:$4 sm:$0xff]   ;;  %v4792_v29 = vmov 0.0   ;;  %vm4793_vm0 = vmmov 0   ;;  %vm2059_vm1 = vcmask 523264  }
  0x72   : > { %v5021_v12 = vcombine.high %v266_v11, %v266_v11  ;;  %v4183_v13 = vld [vmem:[#allocation6 + $0x170] ss:$36 sps:$4 sm:$0xff]   ;;  %v4192_v14 = vld [vmem:[#allocation6 + $0x4] ss:$36 sps:$4 sm:$0xff]   ;;  %v4184_v16 = vld [vmem:[#allocation6 + $0x3f8] ss:$36 sps:$4 sm:$0xff]   ;;  %v5025_v26 = vcombine.low %v266_v11, %v266_v11 }
  0x73   : > { %3853 = vmatpush3.bf16.msra.mxu1 %v4175_v3  ;;  %v4185_v17 = vld [vmem:[#allocation6 + $0x1b8] ss:$36 sps:$4 sm:$0xff]   ;;  %759 = vmatprep.subr.bf16.mxu0 %v4192_v14  ;;  %v4196_v18 = vld [vmem:[#allocation6 + $0x4c] ss:$36 sps:$4 sm:$0xff]   ;;  %v4186_v21 = vld [vmem:[#allocation6 + $0x440] ss:$36 sps:$4 sm:$0xff]  }
  0x74   : > { %3854 = vmatprep.subr.bf16.mxu1 %v4176_v4  ;;  %873 = vmatprep.mubr.bf16.mxu1 %v5021_v12  ;;  %v4198_v19 = vld [vmem:[#allocation6 + $0x48] ss:$36 sps:$4 sm:$0xff]   ;;  %v4200_v20 = vld [vmem:[#allocation6 + $0x94] ss:$36 sps:$4 sm:$0xff]   ;;  %v4187_v22 = vld [vmem:[#allocation6 + $0x200] ss:$36 sps:$4 sm:$0xff]  }
  0x75   : > { %791 = vmatprep.mubr.bf16.mxu0 %v5021_v12  ;;  %760 = vmatpush1.bf16.msra.mxu0 %v4194_v15  ;;  %v4202_v23 = vld [vmem:[#allocation6 + $0x90] ss:$36 sps:$4 sm:$0xff]   ;;  %v4204_v24 = vld [vmem:[#allocation6 + $0xdc] ss:$36 sps:$4 sm:$0xff]   ;;  %v4190_v25 = vld [vmem:[#allocation6 + $0x488] ss:$36 sps:$4 sm:$0xff]  }
  0x76   : > { %761 = vmatprep.subr.bf16.mxu0 %v4196_v18  ;;  %v4206_v27 = vld [vmem:[#allocation6 + $0xd8] ss:$36 sps:$4 sm:$0xff]   ;;  %v4208_v28 = vld [vmem:[#allocation6 + $0x124] ss:$36 sps:$4 sm:$0xff]   ;;  %v4191_v31 = vld [vmem:[#allocation6 + $0x4d0] ss:$36 sps:$4 sm:$0xff]  }
  0x77   : > { %3855 = vmatpush3.bf16.msra.mxu1 %v4177_v5  ;;  %v4210_v30 = vld [vmem:[#allocation6 + $0x120] ss:$36 sps:$4 sm:$0xff]   ;;  %v4212_v32 = vld [vmem:[#allocation6 + $0x16c] ss:$36 sps:$4 sm:$0xff]   ;;  %v4195_v34 = vld [vmem:[#allocation6 + $0x518] ss:$36 sps:$4 sm:$0xff]  }
  0x78   : > { %3856 = vmatprep.subr.bf16.mxu1 %v4178_v6  ;;  %v4214_v33 = vld [vmem:[#allocation6 + $0x168] ss:$36 sps:$4 sm:$0xff]   ;;  %v4216_v35 = vld [vmem:[#allocation6 + $0x1b4] ss:$36 sps:$4 sm:$0xff]   ;;  %v4199_v37 = vld [vmem:[#allocation6 + $0x560] ss:$36 sps:$4 sm:$0xff]  }
  0x79   : > { %762 = vmatpush1.bf16.msra.mxu0 %v4198_v19  ;;  %v4218_v36 = vld [vmem:[#allocation6 + $0x1b0] ss:$36 sps:$4 sm:$0xff]   ;;  %v4223_v38 = vld [vmem:[#allocation6 + $0x1fc] ss:$36 sps:$4 sm:$0xff]   ;;  %v4203_v40 = vld [vmem:[#allocation6 + $0x5a8] ss:$36 sps:$4 sm:$0xff]  }
  0x7a   : > { %763 = vmatprep.subr.bf16.mxu0 %v4200_v20  ;;  %v4225_v39 = vld [vmem:[#allocation6 + $0x1f8] ss:$36 sps:$4 sm:$0xff]   ;;  %v4229_v41 = vld [vmem:[#allocation6 + $0x244] ss:$36 sps:$4 sm:$0xff]   ;;  %v4207_v43 = vld [vmem:[#allocation6 + $0x5f0] ss:$36 sps:$4 sm:$0xff]  }
  0x7b   : > { %3857 = vmatpush3.bf16.msra.mxu1 %v4179_v7  ;;  %v4231_v42 = vld [vmem:[#allocation6 + $0x240] ss:$36 sps:$4 sm:$0xff]   ;;  %v4235_v44 = vld [vmem:[#allocation6 + $0x28c] ss:$36 sps:$4 sm:$0xff]   ;;  %v4211_v46 = vld [vmem:[#allocation6 + $0x638] ss:$36 sps:$4 sm:$0xff]  }
  0x7c   : > { %3858 = vmatprep.subr.bf16.mxu1 %v4180_v8  ;;  %v4237_v45 = vld [vmem:[#allocation6 + $0x288] ss:$36 sps:$4 sm:$0xff]   ;;  %v4241_v47 = vld [vmem:[#allocation6 + $0x2d4] ss:$36 sps:$4 sm:$0xff]   ;;  %v4215_v49 = vld [vmem:[#allocation6 + $0x680] ss:$36 sps:$4 sm:$0xff]  }
  0x7d   : > { %764 = vmatpush1.bf16.msra.mxu0 %v4202_v23  ;;  %v4243_v48 = vld [vmem:[#allocation6 + $0x2d0] ss:$36 sps:$4 sm:$0xff]   ;;  %v4247_v50 = vld [vmem:[#allocation6 + $0x31c] ss:$36 sps:$4 sm:$0xff]   ;;  %v4253_v55 = vld [vmem:[#allocation6 + $0x364] ss:$36 sps:$4 sm:$0xff]  }
  0x7e   : > { %765 = vmatprep.subr.bf16.mxu0 %v4204_v24  ;;  %v4222_v51 = vld [vmem:[#allocation6 + $0x10] ss:$36 sps:$4 sm:$0xff]   ;;  %v4249_v53 = vld [vmem:[#allocation6 + $0x318] ss:$36 sps:$4 sm:$0xff]   ;;  %v4255_v57 = vld [vmem:[#allocation6 + $0x360] ss:$36 sps:$4 sm:$0xff]  }
  0x7f   : > { %3859 = vmatpush3.bf16.msra.mxu1 %v4181_v9  ;;  %v5039_v52 = vld [vmem:[%s5010_s12 + $0x8] ss:$0 sps:$4 sm:$0xff]   ;;  %v4226_v58 = vld [vmem:[#allocation6 + $0x54] ss:$36 sps:$4 sm:$0xff]   ;;  %v4234_v60 = vld [vmem:[#allocation6 + $0xa0] ss:$36 sps:$4 sm:$0xff]  }
  0x80   : > { %3860 = vmatprep.subr.bf16.mxu1 %v4182_v10  ;;  %v4220_v54 = vld [vmem:[#allocation6 + $0xc] ss:$36 sps:$4 sm:$0xff]   ;;  %v4228_v56 = vld [vmem:[#allocation6 + $0x58] ss:$36 sps:$4 sm:$0xff]   ;;  %v4238_v2 = vld [vmem:[#allocation6 + $0xe4] ss:$36 sps:$4 sm:$0xff]  }
  0x81   : > { %766 = vmatpush1.bf16.msra.mxu0 %v4206_v27  ;;  %v4259_v59 = vld [vmem:[#allocation6 + $0x3ac] ss:$36 sps:$4 sm:$0xff]   ;;  %v4232_v62 = vld [vmem:[#allocation6 + $0x9c] ss:$36 sps:$4 sm:$0xff]   ;;  %v4265_v63 = vld [vmem:[#allocation6 + $0x3f4] ss:$36 sps:$4 sm:$0xff]  }
  0x82   : > { %767 = vmatprep.subr.bf16.mxu0 %v4208_v28  ;;  %v4261_v61 = vld [vmem:[#allocation6 + $0x3a8] ss:$36 sps:$4 sm:$0xff]   ;;  %v4267_v1 = vld [vmem:[#allocation6 + $0x3f0] ss:$36 sps:$4 sm:$0xff]   ;;  %v4271_v3 = vld [vmem:[#allocation6 + $0x43c] ss:$36 sps:$4 sm:$0xff]  }
  0x83   : > { %3861 = vmatpush3.bf16.msra.mxu1 %v4183_v13  ;;  %v4240_v0 = vld [vmem:[#allocation6 + $0xe8] ss:$36 sps:$4 sm:$0xff]   ;;  %v4246_v4 = vld [vmem:[#allocation6 + $0x130] ss:$36 sps:$4 sm:$0xff]   ;;  %v4273_v5 = vld [vmem:[#allocation6 + $0x438] ss:$36 sps:$4 sm:$0xff]  }
  0x84   : > { %3862 = vmatprep.subr.bf16.mxu1 %v4184_v16  ;;  %v4244_v6 = vld [vmem:[#allocation6 + $0x12c] ss:$36 sps:$4 sm:$0xff]   ;;  %v4279_v7 = vld [vmem:[#allocation6 + $0x484] ss:$36 sps:$4 sm:$0xff]   ;;  %v4252_v8 = vld [vmem:[#allocation6 + $0x178] ss:$36 sps:$4 sm:$0xff]  }
  0x85   : > { %768 = vmatpush1.bf16.msra.mxu0 %v4210_v30  ;;  %v4277_v9 = vld [vmem:[#allocation6 + $0x480] ss:$36 sps:$4 sm:$0xff]   ;;  %v4250_v10 = vld [vmem:[#allocation6 + $0x174] ss:$36 sps:$4 sm:$0xff]   ;;  %v4285_v11 = vld [vmem:[#allocation6 + $0x4cc] ss:$36 sps:$4 sm:$0xff]  }
  0x86   : > { %769 = vmatprep.subr.bf16.mxu0 %v4212_v32  ;;  %v4258_v13 = vld [vmem:[#allocation6 + $0x1c0] ss:$36 sps:$4 sm:$0xff]   ;;  %v4283_v14 = vld [vmem:[#allocation6 + $0x4c8] ss:$36 sps:$4 sm:$0xff]   ;;  %v4794_v15 = vmov 0   ;;  %s4795_s23 = smov 64  }
  0x87   : > { %3863 = vmatpush3.bf16.msra.mxu1 %v4185_v17  ;;  %v4256_v16 = vld [vmem:[#allocation6 + $0x1bc] ss:$36 sps:$4 sm:$0xff]   ;;  %v4291_v17 = vld [vmem:[#allocation6 + $0x514] ss:$36 sps:$4 sm:$0xff]   ;;  %v4264_v18 = vld [vmem:[#allocation6 + $0x208] ss:$36 sps:$4 sm:$0xff]  }
  0x88   : > { %3864 = vmatprep.subr.bf16.mxu1 %v4186_v21  ;;  %v4289_v19 = vld [vmem:[#allocation6 + $0x510] ss:$36 sps:$4 sm:$0xff]   ;;  %v4262_v20 = vld [vmem:[#allocation6 + $0x204] ss:$36 sps:$4 sm:$0xff]   ;;  %v4297_v21 = vld [vmem:[#allocation6 + $0x55c] ss:$36 sps:$4 sm:$0xff]  }
  0x89   : > { %770 = vmatpush1.bf16.msra.mxu0 %v4214_v33  ;;  %v4295_v23 = vld [vmem:[#allocation6 + $0x558] ss:$36 sps:$4 sm:$0xff]   ;;  %v4268_v24 = vld [vmem:[#allocation6 + $0x24c] ss:$36 sps:$4 sm:$0xff]   ;;  %v4301_v28 = vld [vmem:[#allocation6 + $0x5a0] ss:$36 sps:$4 sm:$0xff]  }
  0x8a   : > { %771 = vmatprep.subr.bf16.mxu0 %v4216_v35  ;;  %v4276_v27 = vld [vmem:[#allocation6 + $0x298] ss:$36 sps:$4 sm:$0xff]   ;;  %v4282_v32 = vld [vmem:[#allocation6 + $0x2e0] ss:$36 sps:$4 sm:$0xff]   ;;  %v4307_v33 = vld [vmem:[#allocation6 + $0x5e8] ss:$36 sps:$4 sm:$0xff]  }
  0x8b   : > { %3865 = vmatpush3.bf16.msra.mxu1 %v4187_v22  ;;  %v4270_v22 = vld [vmem:[#allocation6 + $0x250] ss:$36 sps:$4 sm:$0xff]   ;;  %vm2120_vm2 = vcmask 1043456   ;;  %vm2106_vm4 = vcmask 64512   ;;  %s4073_s25 = smul.u32 24, %s5006_s28  ;;  %p5289_p12 = scmp.ne.s32.totalorder %s5285_s8, 0 }
  0x8c   : > { %3936 = vmatprep.subr.bf16.mxu1 %v4792_v29  ;;  %v4274_v30 = vld [vmem:[#allocation6 + $0x294] ss:$36 sps:$4 sm:$0xff]   ;;  %s4074_s29 = smul.u32 384, %s4775_s18  ;;  %s3410_s18 = scalar_lea.sflag [#allocation5], %s5006_s28 }
  0x8d   : > { %772 = vmatpush1.bf16.msra.mxu0 %v4218_v36  ;;  %v4315_v35 = vld [vmem:[#allocation6 + $0x634] ss:$36 sps:$4 sm:$0xff]   ;;  %v4288_v36 = vld [vmem:[#allocation6 + $0x328] ss:$36 sps:$4 sm:$0xff]   ;;  %s256_s21 = scalar_lea.vmem [#allocation9], %s4073_s25  ;;  %s4797_s7 = smov [#allocation9]  }
  0x8e   : > { %874 = vmatmul.mubr.bf16.vlgmr.msra.gmra.mrb[0].mxu1 %v5025_v26  ;;  %773 = vmatprep.subr.bf16.mxu0 %v4223_v38  ;;  %v4286_v38 = vld [vmem:[#allocation6 + $0x324] ss:$36 sps:$4 sm:$0xff]   ;;  %s3426_s22 = sshll.u32 %s256_s21, 4  ;;  %s5221_s24 = scalar_lea.hbm %s5274_s4, %s4074_s29  ;;  %s5223_s22 = int_to_ptr.vmem [resolvable:$true] %s3426_s22 }
  0x8f   : > { %3937 = vmatpush3.bf16.msra.mxu1 %v4190_v25  ;;  %3952 = vmatprep.mubr.msk.bf16.mxu1 %vm4793_vm0, %v4792_v29  ;;  %v4303_v25 = vld [vmem:[#allocation6 + $0x5a4] ss:$36 sps:$4 sm:$0xff]   ;;  %s4697_s14 = scalar_lea.vmem %s5223_s22, 384  ;;  %s4701_s30 = sshll.u32 %s4797_s7, 4  ;;  %s4702_s30 = int_to_ptr.vmem [resolvable:$false] %s4701_s30 }
  0x90   : > { %3938 = vmatprep.subr.bf16.mxu1 %v4792_v29  ;;  %p4698_p8 = scmp.ne.s32.totalorder %s5223_s22, %s4697_s14  ;;  %s4703_s6 = scalar_lea.vmem %s4702_s30, 768 }
  0x91   : > { %774 = vmatpush1.bf16.msra.mxu0 %v4225_v39  ;;  %v4321_v39 = vld [vmem:[#allocation6 + $0x67c] ss:$36 sps:$4 sm:$0xff]   ;;  %p4704_p3 = scmp.lt.s32.totalorder %s5223_s22, %s4702_s30  ;;  %p4705_p5 = scmp.lt.s32.totalorder %s4703_s6, %s4697_s14 }
  0x92   : > { %775 = vmatprep.subr.bf16.mxu0 %v4229_v41  ;;  %v4319_v41 = vld [vmem:[#allocation6 + $0x678] ss:$36 sps:$4 sm:$0xff]   ;;  %p4699_p1 = pnand %p4698_p8, %p5289_p12 }
  0x93   : > { %3939 = vmatpush3.bf16.msra.mxu1 %v4191_v31  ;;  %v4309_v31 = vld [vmem:[#allocation6 + $0x5ec] ss:$36 sps:$4 sm:$0xff]   ;;  %p4706_p9 = por %p4705_p5, %p4704_p3 }
  0x94   : > { %3940 = vmatprep.subr.bf16.mxu1 %v4792_v29  ;;  %p4700_p10 = pneg %p4699_p1 }
  0x95   : > { %776 = vmatpush1.bf16.msra.mxu0 %v4231_v42  ;;  %v4292_v42 = vld [vmem:[#allocation6 + $0x36c] ss:$36 sps:$4 sm:$0xff]  }
  0x96   : > { %777 = vmatprep.subr.bf16.mxu0 %v4235_v44  ;;  %v4298_v44 = vld [vmem:[#allocation6 + $0x3b4] ss:$36 sps:$4 sm:$0xff]   ;;  %p4707_p2 = pnand %p4706_p9, %p4700_p10 }
  0x97   : > { %3941 = vmatpush3.bf16.msra.mxu1 %v4195_v34  ;;  %v4280_v34 = vld [vmem:[#allocation6 + $0x2dc] ss:$36 sps:$4 sm:$0xff]  }
  0x98   : > { %3942 = vmatprep.subr.bf16.mxu1 %v4792_v29 }
  0x99   : > { %778 = vmatpush1.bf16.msra.mxu0 %v4237_v45  ;;  %v4306_v45 = vld [vmem:[#allocation6 + $0x400] ss:$36 sps:$4 sm:$0xff]  }
  0x9a   : > { %779 = vmatprep.subr.bf16.mxu0 %v4241_v47  ;;  %v4312_v47 = vld [vmem:[#allocation6 + $0x448] ss:$36 sps:$4 sm:$0xff]  }
  0x9b   : > { %3943 = vmatpush3.bf16.msra.mxu1 %v4199_v37  ;;  %v4313_v37 = vld [vmem:[#allocation6 + $0x630] ss:$36 sps:$4 sm:$0xff]  }
  0x9c   : > { %3944 = vmatprep.subr.bf16.mxu1 %v4792_v29 }
  0x9d   : > { %780 = vmatpush1.bf16.msra.mxu0 %v4243_v48  ;;  %v4310_v48 = vld [vmem:[#allocation6 + $0x444] ss:$36 sps:$4 sm:$0xff]  }
  0x9e   : > { %781 = vmatprep.subr.bf16.mxu0 %v4247_v50  ;;  %v4316_v50 = vld [vmem:[#allocation6 + $0x48c] ss:$36 sps:$4 sm:$0xff]  }
  0x9f   : > { %3945 = vmatpush3.bf16.msra.mxu1 %v4203_v40  ;;  %v4294_v40 = vld [vmem:[#allocation6 + $0x370] ss:$36 sps:$4 sm:$0xff]  }
  0xa0   : > { %3946 = vmatprep.subr.bf16.mxu1 %v4792_v29 }
  0xa1   : > { %782 = vmatpush1.bf16.msra.mxu0 %v4249_v53  ;;  %v4322_v53 = vld [vmem:[#allocation6 + $0x4d4] ss:$36 sps:$4 sm:$0xff]  }
  0xa2   : > { %783 = vmatprep.subr.bf16.mxu0 %v4253_v55  ;;  %v4330_v55 = vld [vmem:[#allocation6 + $0x568] ss:$36 sps:$4 sm:$0xff]  }
  0xa3   : > { %3947 = vmatpush3.bf16.msra.mxu1 %v4207_v43  ;;  %v4300_v43 = vld [vmem:[#allocation6 + $0x3b8] ss:$36 sps:$4 sm:$0xff]  }
  0xa4   : > { %3948 = vmatprep.subr.bf16.mxu1 %v4792_v29 }
  0xa5   : > { %784 = vmatpush1.bf16.msra.mxu0 %v4255_v57  ;;  %v4333_v57 = vld [vmem:[#allocation6 + $0x5b0] ss:$36 sps:$4 sm:$0xff]  }
  0xa6   : > { %785 = vmatprep.subr.bf16.mxu0 %v4259_v59  ;;  %v4336_v59 = vld [vmem:[#allocation6 + $0x5f8] ss:$36 sps:$4 sm:$0xff]  }
  0xa7   : > { %3949 = vmatpush3.bf16.msra.mxu1 %v4211_v46  ;;  %v4304_v46 = vld [vmem:[#allocation6 + $0x3fc] ss:$36 sps:$4 sm:$0xff]  }
  0xa8   : > { %3950 = vmatprep.subr.bf16.mxu1 %v4792_v29 }
  0xa9   : > { %786 = vmatpush1.bf16.msra.mxu0 %v4261_v61  ;;  %v4339_v61 = vld [vmem:[#allocation6 + $0x640] ss:$36 sps:$4 sm:$0xff]  }
  0xaa   : > { %787 = vmatprep.subr.bf16.mxu0 %v4265_v63  ;;  %v4342_v63 = vld [vmem:[#allocation6 + $0x688] ss:$36 sps:$4 sm:$0xff]  }
  0xab   : > { %3951 = vmatpush3.bf16.msra.mxu1 %v4215_v49  ;;  %v4318_v49 = vld [vmem:[#allocation6 + $0x490] ss:$36 sps:$4 sm:$0xff]  }
  0xac   : > { %1796 = vmatprep.subr.bf16.mxu1 %v4222_v51  ;;  %v4324_v51 = vld [vmem:[#allocation6 + $0x4d8] ss:$36 sps:$4 sm:$0xff]  }
  0xad   : > { %788 = vmatpush1.bf16.msra.mxu0 %v4267_v1  ;;  %v4346_v1 = vld [vmem:[#allocation6 + $0x20] ss:$36 sps:$4 sm:$0xff]  }
  0xae   : > { %3953 = vmatmul.mubr.bf16.vlgmr.msra.gmra.mrb[4].mxu1 %v5039_v52  ;;  %789 = vmatprep.subr.bf16.mxu0 %v4271_v3  ;;  %v4344_v3 = vld [vmem:[#allocation6 + $0x1c] ss:$36 sps:$4 sm:$0xff]  }
  0xaf   : > { %1797 = vmatpush1.bf16.msra.mxu1 %v4220_v54  ;;  %1828 = vmatprep.mubr.bf16.mxu1 %v5021_v12  ;;  %v4327_v54 = vld [vmem:[#allocation6 + $0x520] ss:$36 sps:$4 sm:$0xff]  }
  0xb0   : > { %1798 = vmatprep.subr.bf16.mxu1 %v4228_v56  ;;  %v4328_v56 = vld [vmem:[#allocation6 + $0x564] ss:$36 sps:$4 sm:$0xff]  }
  0xb1   : > { %790 = vmatpush1.bf16.msra.mxu0 %v4273_v5  ;;  %v4347_v5 = vld [vmem:[#allocation6 + $0x64] ss:$36 sps:$4 sm:$0xff]  }
  0xb2   : > { %800 = vmatprep.subr.bf16.mxu0 %v4279_v7  ;;  %v4350_v7 = vld [vmem:[#allocation6 + $0xac] ss:$36 sps:$4 sm:$0xff]  }
  0xb3   : > { %1799 = vmatpush1.bf16.msra.mxu1 %v4226_v58  ;;  %v4331_v58 = vld [vmem:[#allocation6 + $0x5ac] ss:$36 sps:$4 sm:$0xff]  }
  0xb4   : > { %1800 = vmatprep.subr.bf16.mxu1 %v4234_v60  ;;  %792 = vmatmul.mubr.bf16.vlgmr.msra.gmra.mrb[0].mxu0 %v5025_v26  ;;  %v4334_v60 = vld [vmem:[#allocation6 + $0x5f4] ss:$36 sps:$4 sm:$0xff]  }
  0xb5   : > { %801 = vmatpush1.bf16.msra.mxu0 %v4277_v9  ;;  %832 = vmatprep.mubr.bf16.mxu0 %v4794_v15  ;;  %v4353_v9 = vld [vmem:[#allocation6 + $0xf4] ss:$36 sps:$4 sm:$0xff]  }
  0xb6   : > { %802 = vmatprep.subr.bf16.mxu0 %v4285_v11  ;;  %v4356_v11 = vld [vmem:[#allocation6 + $0x13c] ss:$36 sps:$4 sm:$0xff]  }
  0xb7   : > { %1801 = vmatpush1.bf16.msra.mxu1 %v4232_v62  ;;  %v4337_v62 = vld [vmem:[#allocation6 + $0x63c] ss:$36 sps:$4 sm:$0xff]  }
  0xb8   : > { %1802 = vmatprep.subr.bf16.mxu1 %v4240_v0  ;;  %v4340_v0 = vld [vmem:[#allocation6 + $0x684] ss:$36 sps:$4 sm:$0xff]  }
  0xb9   : > { %803 = vmatpush1.bf16.msra.mxu0 %v4283_v14  ;;  %v4359_v14 = vld [vmem:[#allocation6 + $0x184] ss:$36 sps:$4 sm:$0xff]  }
  0xba   : > { %804 = vmatprep.subr.bf16.mxu0 %v4291_v17  ;;  %v4362_v17 = vld [vmem:[#allocation6 + $0x1cc] ss:$36 sps:$4 sm:$0xff]  }
  0xbb   : > { %1803 = vmatpush1.bf16.msra.mxu1 %v4238_v2  ;;  %v5050_v2 = vld [vmem:[%s5010_s12 + $0x8] ss:$0 sps:$4 sm:$0xff]  }
  0xbc   : > { %1804 = vmatprep.subr.bf16.mxu1 %v4246_v4  ;;  %v4349_v4 = vld [vmem:[#allocation6 + $0x68] ss:$36 sps:$4 sm:$0xff]  }
  0xbd   : > { %805 = vmatpush1.bf16.msra.mxu0 %v4289_v19  ;;  %v4370_v19 = vld [vmem:[#allocation6 + $0x260] ss:$36 sps:$4 sm:$0xff]  }
  0xbe   : > { %806 = vmatprep.subr.bf16.mxu0 %v4297_v21  ;;  %v4373_v21 = vld [vmem:[#allocation6 + $0x2a8] ss:$36 sps:$4 sm:$0xff]  }
  0xbf   : > { %1805 = vmatpush1.bf16.msra.mxu1 %v4244_v6  ;;  %v4352_v6 = vld [vmem:[#allocation6 + $0xb0] ss:$36 sps:$4 sm:$0xff]  }
  0xc0   : > { %1806 = vmatprep.subr.bf16.mxu1 %v4252_v8  ;;  %v4355_v8 = vld [vmem:[#allocation6 + $0xf8] ss:$36 sps:$4 sm:$0xff]  }
  0xc1   : > { %807 = vmatpush1.bf16.msra.mxu0 %v4295_v23  ;;  %v4376_v23 = vld [vmem:[#allocation6 + $0x2f0] ss:$36 sps:$4 sm:$0xff]  }
  0xc2   : > { %808 = vmatprep.subr.bf16.mxu0 %v4303_v25  ;;  %v4379_v25 = vld [vmem:[#allocation6 + $0x338] ss:$36 sps:$4 sm:$0xff]  }
  0xc3   : > { %1807 = vmatpush1.bf16.msra.mxu1 %v4250_v10  ;;  %v4358_v10 = vld [vmem:[#allocation6 + $0x140] ss:$36 sps:$4 sm:$0xff]  }
  0xc4   : > { %1808 = vmatprep.subr.bf16.mxu1 %v4258_v13  ;;  %v4361_v13 = vld [vmem:[#allocation6 + $0x188] ss:$36 sps:$4 sm:$0xff]  }
  0xc5   : > { %809 = vmatpush1.bf16.msra.mxu0 %v4301_v28  ;;  %v4382_v28 = vld [vmem:[#allocation6 + $0x380] ss:$36 sps:$4 sm:$0xff]  }
  0xc6   : > { %810 = vmatprep.subr.bf16.mxu0 %v4309_v31  ;;  %v4409_v31 = vld [vmem:[#allocation6 + $0x18] ss:$36 sps:$4 sm:$0xff]  }
  0xc7   : > { %1809 = vmatpush1.bf16.msra.mxu1 %v4256_v16  ;;  %v4364_v16 = vld [vmem:[#allocation6 + $0x1d0] ss:$36 sps:$4 sm:$0xff]  }
  0xc8   : > { %1810 = vmatprep.subr.bf16.mxu1 %v4264_v18  ;;  %v4365_v18 = vld [vmem:[#allocation6 + $0x214] ss:$36 sps:$4 sm:$0xff]  }
  0xc9   : > { %811 = vmatpush1.bf16.msra.mxu0 %v4307_v33  ;;  %v4380_v33 = vld [vmem:[#allocation6 + $0x37c] ss:$36 sps:$4 sm:$0xff]  }
  0xca   : > { %812 = vmatprep.subr.bf16.mxu0 %v4315_v35  ;;  %v4385_v35 = vld [vmem:[#allocation6 + $0x3c8] ss:$36 sps:$4 sm:$0xff]  }
  0xcb   : > { %1811 = vmatpush1.bf16.msra.mxu1 %v4262_v20  ;;  %v4368_v20 = vld [vmem:[#allocation6 + $0x25c] ss:$36 sps:$4 sm:$0xff]  }
  0xcc   : > { %1812 = vmatprep.subr.bf16.mxu1 %v4270_v22  ;;  %v4371_v22 = vld [vmem:[#allocation6 + $0x2a4] ss:$36 sps:$4 sm:$0xff]  }
  0xcd   : > { %813 = vmatpush1.bf16.msra.mxu0 %v4313_v37  ;;  %v4383_v37 = vld [vmem:[#allocation6 + $0x3c4] ss:$36 sps:$4 sm:$0xff]  }
  0xce   : > { %814 = vmatprep.subr.bf16.mxu0 %v4321_v39  ;;  %v4388_v39 = vld [vmem:[#allocation6 + $0x410] ss:$36 sps:$4 sm:$0xff]  }
  0xcf   : > { %1813 = vmatpush1.bf16.msra.mxu1 %v4268_v24  ;;  %v4374_v24 = vld [vmem:[#allocation6 + $0x2ec] ss:$36 sps:$4 sm:$0xff]  }
  0xd0   : > { %1814 = vmatprep.subr.bf16.mxu1 %v4276_v27  ;;  %v4377_v27 = vld [vmem:[#allocation6 + $0x334] ss:$36 sps:$4 sm:$0xff]  }
  0xd1   : > { %815 = vmatpush1.bf16.msra.mxu0 %v4319_v41  ;;  %v4386_v41 = vld [vmem:[#allocation6 + $0x40c] ss:$36 sps:$4 sm:$0xff]  }
  0xd2   : > { %1878 = vmatprep.subr.bf16.mxu0 %v4409_v31 }
  0xd3   : > { %1815 = vmatpush1.bf16.msra.mxu1 %v4274_v30  ;;  %v4407_v30 = vld [vmem:[#allocation6 + $0x14] ss:$36 sps:$4 sm:$0xff]  }
  0xd4   : > { %1816 = vmatprep.subr.bf16.mxu1 %v4282_v32  ;;  %833 = vmatmul.mubr.bf16.vlgmr.msra.gmra.mrb[0].mxu0 %v5039_v52  ;;  %v4325_v52 = vld [vmem:[#allocation6 + $0x51c] ss:$36 sps:$4 sm:$0xff]  }
  0xd5   : > { %1910 = vmatprep.mubr.bf16.mxu0 %v5021_v12  ;;  %v4415_v32 = vld [vmem:[#allocation6 + $0x60] ss:$36 sps:$4 sm:$0xff]   ;;  %1879 = vmatpush1.bf16.msra.mxu0 %v4407_v30 }
  0xd6   : > { %1880 = vmatprep.subr.bf16.mxu0 %v4415_v32  ;;  %v4458_v32 = vld [vmem:[#allocation6 + $0x404] ss:$36 sps:$4 sm:$0xff]  }
  0xd7   : > { %1817 = vmatpush1.bf16.msra.mxu1 %v4280_v34  ;;  %v4413_v34 = vld [vmem:[#allocation6 + $0x5c] ss:$36 sps:$4 sm:$0xff]  }
  0xd8   : > { %1818 = vmatprep.subr.bf16.mxu1 %v4288_v36  ;;  %v4421_v36 = vld [vmem:[#allocation6 + $0xa8] ss:$36 sps:$4 sm:$0xff]  }
  0xd9   : > { %1881 = vmatpush1.bf16.msra.mxu0 %v4413_v34  ;;  %v4461_v34 = vld [vmem:[#allocation6 + $0x44c] ss:$36 sps:$4 sm:$0xff]  }
  0xda   : > { %1882 = vmatprep.subr.bf16.mxu0 %v4421_v36  ;;  %v4464_v36 = vld [vmem:[#allocation6 + $0x494] ss:$36 sps:$4 sm:$0xff]  }
  0xdb   : > { %1819 = vmatpush1.bf16.msra.mxu1 %v4286_v38  ;;  %v4419_v38 = vld [vmem:[#allocation6 + $0xa4] ss:$36 sps:$4 sm:$0xff]  }
  0xdc   : > { %1820 = vmatprep.subr.bf16.mxu1 %v4294_v40  ;;  %v4427_v40 = vld [vmem:[#allocation6 + $0xf0] ss:$36 sps:$4 sm:$0xff]  }
  0xdd   : > { %1883 = vmatpush1.bf16.msra.mxu0 %v4419_v38  ;;  %v4467_v38 = vld [vmem:[#allocation6 + $0x4dc] ss:$36 sps:$4 sm:$0xff]  }
  0xde   : > { %1884 = vmatprep.subr.bf16.mxu0 %v4427_v40  ;;  %v4470_v40 = vld [vmem:[#allocation6 + $0x524] ss:$36 sps:$4 sm:$0xff]  }
  0xdf   : > { %1821 = vmatpush1.bf16.msra.mxu1 %v4292_v42  ;;  %v4425_v42 = vld [vmem:[#allocation6 + $0xec] ss:$36 sps:$4 sm:$0xff]  }
  0xe0   : > { %1822 = vmatprep.subr.bf16.mxu1 %v4300_v43  ;;  %v4391_v43 = vld [vmem:[#allocation6 + $0x458] ss:$36 sps:$4 sm:$0xff]  }
  0xe1   : > { %1885 = vmatpush1.bf16.msra.mxu0 %v4425_v42  ;;  %v4473_v42 = vld [vmem:[#allocation6 + $0x56c] ss:$36 sps:$4 sm:$0xff]  }
  0xe3   : > { %1823 = vmatpush1.bf16.msra.mxu1 %v4298_v44  ;;  %v4430_v44 = vld [vmem:[#allocation6 + $0x138] ss:$36 sps:$4 sm:$0xff]  }
  0xe4   : > { %1824 = vmatprep.subr.bf16.mxu1 %v4306_v45  ;;  %v4389_v45 = vld [vmem:[#allocation6 + $0x454] ss:$36 sps:$4 sm:$0xff]   ;;  %1886 = vmatprep.subr.bf16.mxu0 %v4430_v44 }
  0xe5   : > { %v4476_v44 = vld [vmem:[#allocation6 + $0x5b4] ss:$36 sps:$4 sm:$0xff]  }
  0xe7   : > { %1825 = vmatpush1.bf16.msra.mxu1 %v4304_v46  ;;  %v4428_v46 = vld [vmem:[#allocation6 + $0x134] ss:$36 sps:$4 sm:$0xff]  }
  0xe8   : > { %1826 = vmatprep.subr.bf16.mxu1 %v4312_v47  ;;  %v4394_v47 = vld [vmem:[#allocation6 + $0x4a0] ss:$36 sps:$4 sm:$0xff]   ;;  %1887 = vmatpush1.bf16.msra.mxu0 %v4428_v46  ;;  %v4484_v46 = vld [vmem:[#allocation6 + $0x648] ss:$36 sps:$4 sm:$0xff]  }
  0xeb   : > { %1827 = vmatpush1.bf16.msra.mxu1 %v4310_v48  ;;  %v4392_v48 = vld [vmem:[#allocation6 + $0x49c] ss:$36 sps:$4 sm:$0xff]  }
  0xec   : > { %1837 = vmatprep.subr.bf16.mxu1 %v4318_v49  ;;  %v4397_v49 = vld [vmem:[#allocation6 + $0x4e8] ss:$36 sps:$4 sm:$0xff]  }
  0xee   : > { %1829 = vmatmul.mubr.bf16.vlgmr.msra.gmra.mrb[8].mxu1 %v5025_v26 }
  0xef   : > { %1838 = vmatpush1.bf16.msra.mxu1 %v4316_v50  ;;  %1869 = vmatprep.mubr.bf16.mxu1 %v4794_v15  ;;  %v4395_v50 = vld [vmem:[#allocation6 + $0x4e4] ss:$36 sps:$4 sm:$0xff]  }
  0xf0   : > { %1839 = vmatprep.subr.bf16.mxu1 %v4324_v51  ;;  %v4400_v51 = vld [vmem:[#allocation6 + $0x530] ss:$36 sps:$4 sm:$0xff]  }
  0xf3   : > { %1840 = vmatpush1.bf16.msra.mxu1 %v4322_v53  ;;  %v4398_v53 = vld [vmem:[#allocation6 + $0x52c] ss:$36 sps:$4 sm:$0xff]  }
  0xf4   : > { %1841 = vmatprep.subr.bf16.mxu1 %v4327_v54  ;;  %v4403_v54 = vld [vmem:[#allocation6 + $0x578] ss:$36 sps:$4 sm:$0xff]  }
  0xf7   : > { %1842 = vmatpush1.bf16.msra.mxu1 %v4325_v52  ;;  %v4401_v52 = vld [vmem:[#allocation6 + $0x574] ss:$36 sps:$4 sm:$0xff]  }
  0xf8   : > { %1843 = vmatprep.subr.bf16.mxu1 %v4330_v55  ;;  %v4406_v55 = vld [vmem:[#allocation6 + $0x5c0] ss:$36 sps:$4 sm:$0xff]  }
  0xfb   : > { %1844 = vmatpush1.bf16.msra.mxu1 %v4328_v56  ;;  %v4404_v56 = vld [vmem:[#allocation6 + $0x5bc] ss:$36 sps:$4 sm:$0xff]  }
  0xfc   : > { %1845 = vmatprep.subr.bf16.mxu1 %v4333_v57  ;;  %v4412_v57 = vld [vmem:[#allocation6 + $0x608] ss:$36 sps:$4 sm:$0xff]  }
  0xff   : > { %1846 = vmatpush1.bf16.msra.mxu1 %v4331_v58  ;;  %v4410_v58 = vld [vmem:[#allocation6 + $0x604] ss:$36 sps:$4 sm:$0xff]  }
 0x100   : > { %1847 = vmatprep.subr.bf16.mxu1 %v4336_v59  ;;  %v4418_v59 = vld [vmem:[#allocation6 + $0x650] ss:$36 sps:$4 sm:$0xff]  }
 0x103   : > { %1848 = vmatpush1.bf16.msra.mxu1 %v4334_v60 }
 0x104   : > { %1849 = vmatprep.subr.bf16.mxu1 %v4339_v61 }
 0x107   : > { %1850 = vmatpush1.bf16.msra.mxu1 %v4337_v62  ;;  %v4433_v62 = vld [vmem:[#allocation6 + $0x180] ss:$36 sps:$4 sm:$0xff]  }
 0x108   : > { %1851 = vmatprep.subr.bf16.mxu1 %v4342_v63  ;;  %1888 = vmatprep.subr.bf16.mxu0 %v4433_v62 }
 0x10b   : > { %1852 = vmatpush1.bf16.msra.mxu1 %v4340_v0 }
 0x10c   : > { %1960 = vmatprep.subr.bf16.mxu1 %v4346_v1  ;;  %v4416_v1 = vld [vmem:[#allocation6 + $0x64c] ss:$36 sps:$4 sm:$0xff]  }
 0x10e   : > { %1870 = vmatmul.mubr.bf16.vlgmr.msra.gmra.mrb[8].mxu1 %v5050_v2 }
 0x10f   : > { %1961 = vmatpush1.bf16.msra.mxu1 %v4344_v3  ;;  %1992 = vmatprep.mubr.bf16.mxu1 %v5021_v12  ;;  %v4367_v12 = vld [vmem:[#allocation6 + $0x218] ss:$36 sps:$4 sm:$0xff]  }
 0x110   : > { %1962 = vmatprep.subr.bf16.mxu1 %v4349_v4  ;;  %v4431_v3 = vld [vmem:[#allocation6 + $0x17c] ss:$36 sps:$4 sm:$0xff]  }
 0x111   : > { %1889 = vmatpush1.bf16.msra.mxu0 %v4431_v3 }
 0x113   : > { %1963 = vmatpush1.bf16.msra.mxu1 %v4347_v5  ;;  %v4424_v5 = vld [vmem:[#allocation6 + $0x698] ss:$36 sps:$4 sm:$0xff]  }
 0x114   : > { %1964 = vmatprep.subr.bf16.mxu1 %v4352_v6  ;;  %v4434_v6 = vld [vmem:[#allocation6 + $0x1c4] ss:$36 sps:$4 sm:$0xff]  }
 0x117   : > { %1965 = vmatpush1.bf16.msra.mxu1 %v4350_v7  ;;  %v4436_v7 = vld [vmem:[#allocation6 + $0x1c8] ss:$36 sps:$4 sm:$0xff]  }
 0x118   : > { %1966 = vmatprep.subr.bf16.mxu1 %v4355_v8  ;;  %v4422_v8 = vld [vmem:[#allocation6 + $0x694] ss:$36 sps:$4 sm:$0xff]   ;;  %1890 = vmatprep.subr.bf16.mxu0 %v4436_v7 }
 0x119   : > { %1891 = vmatpush1.bf16.msra.mxu0 %v4434_v6 }
 0x11b   : > { %1967 = vmatpush1.bf16.msra.mxu1 %v4353_v9  ;;  %v4439_v9 = vld [vmem:[#allocation6 + $0x210] ss:$36 sps:$4 sm:$0xff]  }
 0x11c   : > { %1968 = vmatprep.subr.bf16.mxu1 %v4358_v10  ;;  %v4437_v10 = vld [vmem:[#allocation6 + $0x20c] ss:$36 sps:$4 sm:$0xff]   ;;  %1892 = vmatprep.subr.bf16.mxu0 %v4439_v9 }
 0x11d   : > { %1893 = vmatpush1.bf16.msra.mxu0 %v4437_v10 }
 0x11f   : > { %1969 = vmatpush1.bf16.msra.mxu1 %v4356_v11  ;;  %v4442_v11 = vld [vmem:[#allocation6 + $0x258] ss:$36 sps:$4 sm:$0xff]  }
 0x120   : > { %1970 = vmatprep.subr.bf16.mxu1 %v4361_v13  ;;  %v4440_v13 = vld [vmem:[#allocation6 + $0x254] ss:$36 sps:$4 sm:$0xff]   ;;  %1894 = vmatprep.subr.bf16.mxu0 %v4442_v11 }
 0x121   : > { %1895 = vmatpush1.bf16.msra.mxu0 %v4440_v13 }
 0x123   : > { %1971 = vmatpush1.bf16.msra.mxu1 %v4359_v14  ;;  %v4445_v14 = vld [vmem:[#allocation6 + $0x2a0] ss:$36 sps:$4 sm:$0xff]  }
 0x124   : > { %1972 = vmatprep.subr.bf16.mxu1 %v4364_v16  ;;  %v4443_v16 = vld [vmem:[#allocation6 + $0x29c] ss:$36 sps:$4 sm:$0xff]   ;;  %1896 = vmatprep.subr.bf16.mxu0 %v4445_v14 }
 0x125   : > { %1897 = vmatpush1.bf16.msra.mxu0 %v4443_v16  ;;  %v2051_v16 = vlaneseq }
 0x127   : > { %1973 = vmatpush1.bf16.msra.mxu1 %v4362_v17  ;;  %v4448_v17 = vld [vmem:[#allocation6 + $0x2e8] ss:$36 sps:$4 sm:$0xff]  }
 0x128   : > { %1974 = vmatprep.subr.bf16.mxu1 %v4367_v12  ;;  %v4446_v12 = vld [vmem:[#allocation6 + $0x2e4] ss:$36 sps:$4 sm:$0xff]   ;;  %1898 = vmatprep.subr.bf16.mxu0 %v4448_v17  ;;  %v5088_v17 = vshrl.u32 %v2051_v16, 7 }
 0x129   : > { %1899 = vmatpush1.bf16.msra.mxu0 %v4446_v12  ;;  %v2056_v12 = vand.u32 127, %v2051_v16 }
 0x12b   : > { %1975 = vmatpush1.bf16.msra.mxu1 %v4365_v18  ;;  %v4451_v18 = vld [vmem:[#allocation6 + $0x330] ss:$36 sps:$4 sm:$0xff]   ;;  %vm2057_vm3 = vcmp.le.s32.totalorder %v2056_v12, %v5088_v17 }
 0x12c   : > { %1976 = vmatprep.subr.bf16.mxu1 %v4370_v19  ;;  %v4449_v19 = vld [vmem:[#allocation6 + $0x32c] ss:$36 sps:$4 sm:$0xff]   ;;  %1900 = vmatprep.subr.bf16.mxu0 %v4451_v18  ;;  %v4796_v18 = vmov -1e+30  }
 0x12d   : > { %1901 = vmatpush1.bf16.msra.mxu0 %v4449_v19  ;;  %v5091_v19 = vsel %vm2057_vm3, 0.0, %v4796_v18 }
 0x12f   : > { %1977 = vmatpush1.bf16.msra.mxu1 %v4368_v20  ;;  %v4454_v20 = vld [vmem:[#allocation6 + $0x378] ss:$36 sps:$4 sm:$0xff]  }
 0x130   : > { %1978 = vmatprep.subr.bf16.mxu1 %v4373_v21  ;;  %v4452_v21 = vld [vmem:[#allocation6 + $0x374] ss:$36 sps:$4 sm:$0xff]   ;;  %1902 = vmatprep.subr.bf16.mxu0 %v4454_v20 }
 0x131   : > { %1903 = vmatpush1.bf16.msra.mxu0 %v4452_v21 }
 0x133   : > { %1979 = vmatpush1.bf16.msra.mxu1 %v4371_v22  ;;  %v4457_v22 = vld [vmem:[#allocation6 + $0x3c0] ss:$36 sps:$4 sm:$0xff]  }
 0x134   : > { %1980 = vmatprep.subr.bf16.mxu1 %v4376_v23  ;;  %1904 = vmatprep.subr.bf16.mxu0 %v4457_v22 }
 0x137   : > { %1981 = vmatpush1.bf16.msra.mxu1 %v4374_v24  ;;  %v4455_v24 = vld [vmem:[#allocation6 + $0x3bc] ss:$36 sps:$4 sm:$0xff]  }
 0x138   : > { %1982 = vmatprep.subr.bf16.mxu1 %v4379_v25  ;;  %1905 = vmatpush1.bf16.msra.mxu0 %v4455_v24 }
 0x13b   : > { %1983 = vmatpush1.bf16.msra.mxu1 %v4377_v27 }
 0x13c   : > { %1984 = vmatprep.subr.bf16.mxu1 %v4382_v28  ;;  %v4460_v28 = vld [vmem:[#allocation6 + $0x408] ss:$36 sps:$4 sm:$0xff]  }
 0x13d   : > { %1906 = vmatprep.subr.bf16.mxu0 %v4460_v28 }
 0x13e   : > { %1907 = vmatpush1.bf16.msra.mxu0 %v4458_v32 }
 0x13f   : > { %1985 = vmatpush1.bf16.msra.mxu1 %v4380_v33  ;;  %v4463_v33 = vld [vmem:[#allocation6 + $0x450] ss:$36 sps:$4 sm:$0xff]  }
 0x140   : > { %1986 = vmatprep.subr.bf16.mxu1 %v4385_v35  ;;  %1908 = vmatprep.subr.bf16.mxu0 %v4463_v33  ;;  %v4466_v35 = vld [vmem:[#allocation6 + $0x498] ss:$36 sps:$4 sm:$0xff]  }
 0x142   : > { %1909 = vmatpush1.bf16.msra.mxu0 %v4461_v34 }
 0x143   : > { %1987 = vmatpush1.bf16.msra.mxu1 %v4383_v37  ;;  %1919 = vmatprep.subr.bf16.mxu0 %v4466_v35  ;;  %v4469_v37 = vld [vmem:[#allocation6 + $0x4e0] ss:$36 sps:$4 sm:$0xff]  }
 0x144   : > { %1988 = vmatprep.subr.bf16.mxu1 %v4388_v39  ;;  %v4472_v39 = vld [vmem:[#allocation6 + $0x528] ss:$36 sps:$4 sm:$0xff]  }
 0x145   : > { %1911 = vmatmul.mubr.bf16.vlgmr.msra.gmra.mrb[4].mxu0 %v5025_v26 }
 0x146   : > { %1920 = vmatpush1.bf16.msra.mxu0 %v4464_v36  ;;  %1951 = vmatprep.mubr.bf16.mxu0 %v4794_v15 }
 0x147   : > { %1989 = vmatpush1.bf16.msra.mxu1 %v4386_v41  ;;  %1921 = vmatprep.subr.bf16.mxu0 %v4469_v37  ;;  %v4475_v41 = vld [vmem:[#allocation6 + $0x570] ss:$36 sps:$4 sm:$0xff]  }
 0x148   : > { %1990 = vmatprep.subr.bf16.mxu1 %v4391_v43  ;;  %v4478_v43 = vld [vmem:[#allocation6 + $0x5b8] ss:$36 sps:$4 sm:$0xff]  }
 0x14a   : > { %1922 = vmatpush1.bf16.msra.mxu0 %v4467_v38 }
 0x14b   : > { %1991 = vmatpush1.bf16.msra.mxu1 %v4389_v45  ;;  %1923 = vmatprep.subr.bf16.mxu0 %v4472_v39  ;;  %v4481_v45 = vld [vmem:[#allocation6 + $0x600] ss:$36 sps:$4 sm:$0xff]  }
 0x14c   : > { %2001 = vmatprep.subr.bf16.mxu1 %v4394_v47  ;;  %v4482_v47 = vld [vmem:[#allocation6 + $0x644] ss:$36 sps:$4 sm:$0xff]  }
 0x14e   : > { %1993 = vmatmul.mubr.bf16.vlgmr.msra.gmra.mrb[12].mxu1 %v5025_v26  ;;  %1924 = vmatpush1.bf16.msra.mxu0 %v4470_v40  ;;  %v4479_v26 = vld [vmem:[#allocation6 + $0x5fc] ss:$36 sps:$4 sm:$0xff]  }
 0x14f   : > { %2002 = vmatpush1.bf16.msra.mxu1 %v4392_v48  ;;  %2033 = vmatprep.mubr.bf16.mxu1 %v4794_v15  ;;  %v4487_v48 = vld [vmem:[#allocation6 + $0x690] ss:$36 sps:$4 sm:$0xff]  }
 0x150   : > { %2003 = vmatprep.subr.bf16.mxu1 %v4397_v49  ;;  %1925 = vmatprep.subr.bf16.mxu0 %v4475_v41  ;;  %v4485_v49 = vld [vmem:[#allocation6 + $0x68c] ss:$36 sps:$4 sm:$0xff]  }
 0x152   : > { %1926 = vmatpush1.bf16.msra.mxu0 %v4473_v42 }
 0x153   : > { %2004 = vmatpush1.bf16.msra.mxu1 %v4395_v50  ;;  %1927 = vmatprep.subr.bf16.mxu0 %v4478_v43 }
 0x154   : > { %2005 = vmatprep.subr.bf16.mxu1 %v4400_v51 }
 0x156   : > { %1928 = vmatpush1.bf16.msra.mxu0 %v4476_v44 }
 0x157   : > { %2006 = vmatpush1.bf16.msra.mxu1 %v4398_v53  ;;  %1929 = vmatprep.subr.bf16.mxu0 %v4481_v45 }
 0x158   : > { %2007 = vmatprep.subr.bf16.mxu1 %v4403_v54 }
 0x15a   : > { %1930 = vmatpush1.bf16.msra.mxu0 %v4479_v26 }
 0x15b   : > { %2008 = vmatpush1.bf16.msra.mxu1 %v4401_v52  ;;  %1931 = vmatprep.subr.bf16.mxu0 %v4484_v46 }
 0x15c   : > { %2009 = vmatprep.subr.bf16.mxu1 %v4406_v55 }
 0x15e   : > { %1932 = vmatpush1.bf16.msra.mxu0 %v4482_v47 }
 0x15f   : > { %2010 = vmatpush1.bf16.msra.mxu1 %v4404_v56  ;;  %1933 = vmatprep.subr.bf16.mxu0 %v4487_v48 }
 0x160   : > { %2011 = vmatprep.subr.bf16.mxu1 %v4412_v57 }
 0x161   : > { %v3866_v60 = vpop.f32.mrb[0].mxu1 }
 0x162   : > { %v3867_v61 = vpop.f32.mrb[1].mxu1  ;;  %1934 = vmatpush1.bf16.msra.mxu0 %v4485_v49 }
 0x163   : > { %v3868_v63 = vadd.f32 %v3867_v61, %v3866_v60  ;;  %v3869_v0 = vpop.f32.mrb[2].mxu1  ;;  %2012 = vmatpush1.bf16.msra.mxu1 %v4410_v58  ;;  %3968 = vmatprep.subr.bf16.mxu0 %v4792_v29 }
 0x164   : > { %v3870_v4 = vpop.f32.mrb[3].mxu1  ;;  %2013 = vmatprep.subr.bf16.mxu1 %v4418_v59 }
 0x165   : > { %1952 = vmatmul.mubr.bf16.vlgmr.msra.gmra.mrb[4].mxu0 %v5050_v2 }
 0x166   : > { %3970 = vmatprep.mubr.msk.bf16.mxu0 %vm4793_vm0, %v4792_v29 }
 0x167   : > { %2014 = vmatpush1.bf16.msra.mxu1 %v4416_v1 }
 0x168   : > { %2015 = vmatprep.subr.bf16.mxu1 %v4424_v5 }
 0x16b   : > { %2016 = vmatpush1.bf16.msra.mxu1 %v4422_v8 }
 0x16c   : > { %3956 = vmatprep.subr.bf16.mxu1 %v4792_v29 }
 0x16e   : > { %2034 = vmatmul.mubr.bf16.vlgmr.msra.gmra.mrb[12].mxu1 %v5050_v2 }
 0x16f   : > { %3958 = vmatprep.mubr.msk.bf16.mxu1 %vm4793_vm0, %v4792_v29 }
 0x181   : > { %v915_v23 = vpop.f32.mrb[4].mxu1 }
 0x182   : > { %v5060_v25 = vadd.f32 %v3868_v63, %v915_v23  ;;  %v3954_v27 = vpop.f32.mrb[5].mxu1 }
 0x183   : > { %v918_v30 = vpop.f32.mrb[6].mxu1 }
 0x184   : > { %v3955_v31 = vpop.f32.mrb[7].mxu1 }
 0x1a7   : > { %v834_v50 = vpop.f32.mrb[0].mxu0 }
 0x1a8   : > { %v836_v51 = vpop.f32.mrb[1].mxu0  ;;  %v2042_v2 = vpack.c.bf16 %v834_v50, %v834_v50 }
 0x1a9   : > { %v838_v53 = vpop.f32.mrb[2].mxu0  ;;  %v2043_v30 = vpack.c.bf16 %v836_v51, %v836_v51  ;;  %v2044_v51 = vpack.c.bf16 %v5060_v25, %v5060_v25 }
 0x1aa   : > { %v839_v54 = vpop.f32.mrb[3].mxu0 }
 0x1e1   : > { %v1871_v52 = vpop.f32.mrb[8].mxu1 }
 0x1e2   : > { %v2045_v55 = vpack.c.bf16 %v1871_v52, %v1871_v52  ;;  %v1873_v56 = vpop.f32.mrb[9].mxu1 }
 0x1e3   : > { %v1875_v57 = vpop.f32.mrb[10].mxu1  ;;  %v2046_v28 = vpack.c.bf16 %v1873_v56, %v1873_v56 }
 0x1e4   : > { %v2064_v58 = vsel %vm2059_vm1, %v2045_v55, 0  ;;  %2170 = vrot.lane.b32.xlu0 %v2045_v55, %s4795_s23  ;;  %v1876_v59 = vpop.f32.mrb[11].mxu1 }
 0x1e5   : > { %3957 = vmatpush3.bf16.xpose.msra.mxu1 %v2064_v58  ;;  %v2290_v38 = vsel %vm2059_vm1, %v2046_v28, 0 }
 0x1e6   : > { %3962 = vmatprep.subr.bf16.mxu1 %v4792_v29 }
 0x1e8   : > { %2167 = vrot.lane.b32.xlu0 %v2042_v2, %s4795_s23 }
 0x1ec   : > { %3959 = vmatmul.mubr.msk.bf16.vlgmr.msra.gmra.mrb[16].mxu1 %vm2059_vm1, %v2042_v2 }
 0x1ed   : > { %3964 = vmatprep.mubr.msk.bf16.mxu1 %vm4793_vm0, %v4792_v29 }
 0x238   : > { %v5082_v4 = vpop.f32.mrb[4].mxu0 }
 0x239   : > { %v1955_v5 = vpop.f32.mrb[5].mxu0  ;;  %v2047_v50 = vpack.c.bf16 %v5082_v4, %v5082_v4 }
 0x23a   : > { %v2048_v6 = vpack.c.bf16 %v1955_v5, %v1955_v5  ;;  %v1957_v7 = vpop.f32.mrb[6].mxu0 }
 0x23b   : > { %v1958_v8 = vpop.f32.mrb[7].mxu0 }
 0x23c   : > { %v2122_v9 = vsel %vm2120_vm2, %v2048_v6, 0 }
 0x23d   : > { %3963 = vmatpush3.bf16.msra.mxu1 %v2122_v9 }
 0x23e   : > { %4010 = vmatprep.subr.bf16.mxu1 %v4792_v29 }
 0x241   : > { %v2035_v60 = vpop.f32.mrb[12].mxu1 }
 0x242   : > { %v5075_v61 = vpop.f32.mrb[13].mxu1  ;;  %v2049_v39 = vpack.c.bf16 %v2035_v60, %v2035_v60 }
 0x243   : > { %v2039_v62 = vpop.f32.mrb[14].mxu1 }
 0x244   : > { %v2040_v63 = vpop.f32.mrb[15].mxu1  ;;  %v2346_v40 = vsel %vm2120_vm2, %v2049_v39, 0 }
 0x256   : > { %v2171_v0 = vpop.permute.xlu0 %2170 }
 0x257   : > { %v2176_v1 = vsel %vm2059_vm1, %v2171_v0, 0 }
 0x258   : > { %3969 = vmatpush3.bf16.xpose.msra.mxu0 %v2176_v1 }
 0x259   : > { %3974 = vmatprep.subr.bf16.mxu0 %v4792_v29 }
 0x25a   : > { %v2168_v3 = vpop.permute.xlu0 %2167 }
 0x25f   : > { %3971 = vmatmul.mubr.msk.bf16.vlgmr.msra.gmra.mrb[8].mxu0 %vm2059_vm1, %v2168_v3 }
 0x260   : > { %3976 = vmatprep.mubr.msk.bf16.mxu0 %vm4793_vm0, %v4792_v29 }
 0x2bf   : > { %v5086_v10 = vpop.f32.mrb[16].mxu1 }
 0x2c0   : > { %v3960_v11 = vpop.f32.mrb[17].mxu1 }
 0x2c1   : > { %v2103_v13 = vpop.f32.mrb[18].mxu1 }
 0x2c2   : > { %v3961_v14 = vpop.f32.mrb[19].mxu1 }
 0x332   : > { %v2212_v20 = vpop.f32.mrb[8].mxu0 }
 0x333   : > { %v2213_v21 = vadd.f32 %v2212_v20, %v5091_v19  ;;  %v3972_v22 = vpop.f32.mrb[9].mxu0 }
 0x334   : > { %v2215_v23 = vpop.f32.mrb[10].mxu0  ;;  %v2514_v22 = vsel %vm2059_vm1, %v2047_v50, 0 }
 0x335   : > { %v3973_v24 = vpop.f32.mrb[11].mxu0  ;;  %v2218_v27 = vsel %vm2106_vm4, %v2213_v21, -inf }
 0x336   : > { %2219 = vmax.xlane.f32.xlu1 %v2218_v27 }
 0x347   : > { %2229 = vrot.lane.b32.xlu1 %v2048_v6, %s4795_s23  ;;  %v2101_v6 = vadd.f32 %v5086_v10, %v5091_v19  ;;  %v2050_v10 = vpack.c.bf16 %v5075_v61, %v5075_v61 }
 0x349   : > { %v2107_v9 = vsel %vm2106_vm4, %v2101_v6, -inf  ;;  %v2570_v27 = vsel %vm2120_vm2, %v2050_v10, 0 }
 0x34b   : > { %2394 = vrot.lane.b32.xlu1 %v2046_v28, %s4795_s23 }
 0x34f   : > { %2391 = vrot.lane.b32.xlu1 %v2043_v30, %s4795_s23 }
 0x3c3   : > { %v2220_v31 = vpop.xlane.xlu1 %2219 }
 0x3c4   : > { %v2221_v32 = vsub.f32 %v2213_v21, %v2220_v31 }
 0x3c6   : > { %v2222_v33 = vmul.f32 1.442695, %v2221_v32 }
 0x3c7   : > { %v2230_v34 = vpop.permute.xlu1 %2229 }
 0x3c8   : > { %4587 = vpow2.f32 %v2222_v33  ;;  %v2235_v35 = vsel %vm2120_vm2, %v2230_v34, 0 }
 0x3c9   : > { %3975 = vmatpush3.bf16.msra.mxu0 %v2235_v35 }
 0x3ca   : > { %3980 = vmatprep.subr.bf16.mxu0 %v4792_v29 }
 0x3cb   : > { %v2395_v56 = vpop.permute.xlu1 %2394 }
 0x3cc   : > { %v2400_v58 = vsel %vm2059_vm1, %v2395_v56, 0  ;;  %v4490_v56 = vld [vmem:[#allocation8 + $0x4] ss:$12 sps:$4 sm:$0xff]  }
 0x3cf   : > { %v2392_v2 = vpop.permute.xlu1 %2391 }
 0x3d2   : > { %v5100_v36 = vpop.eup %4587 }
 0x3d3   : > { %v2227_v37 = vpack.c.bf16 %v5100_v36, %v5100_v36 }
 0x3d5   : > { %3977 = vmatmul.mubr.msk.bf16.vlgmr.msra.gmra.mrb[12].mxu0 %vm2106_vm4, %v2227_v37 }
 0x3d6   : > { %3981 = vmatpush3.bf16.xpose.msra.mxu0 %v2290_v38  ;;  %3982 = vmatprep.mubr.msk.bf16.mxu0 %vm4793_vm0, %v4792_v29 }
 0x3d7   : > { %3986 = vmatprep.subr.bf16.mxu0 %v4792_v29 }
 0x3dd   : > { %3983 = vmatmul.mubr.msk.bf16.vlgmr.msra.gmra.mrb[16].mxu0 %vm2059_vm1, %v2043_v30 }
 0x3de   : > { %3987 = vmatpush3.bf16.msra.mxu0 %v2346_v40  ;;  %3988 = vmatprep.mubr.msk.bf16.mxu0 %vm4793_vm0, %v4792_v29 }
 0x3df   : > { %3992 = vmatprep.subr.bf16.mxu0 %v4792_v29 }
 0x4a8   : > { %v5114_v41 = vpop.f32.mrb[12].mxu0 }
 0x4a9   : > { %v3978_v42 = vpop.f32.mrb[13].mxu0 }
 0x4aa   : > { %v2274_v43 = vpop.f32.mrb[14].mxu0 }
 0x4ab   : > { %v3979_v44 = vpop.f32.mrb[15].mxu0 }
 0x4b0   : > { %v2326_v45 = vpop.f32.mrb[16].mxu0 }
 0x4b1   : > { %v2327_v26 = vadd.f32 %v2326_v45, %v5091_v19  ;;  %v3984_v46 = vpop.f32.mrb[17].mxu0 }
 0x4b2   : > { %v2329_v47 = vpop.f32.mrb[18].mxu0 }
 0x4b3   : > { %v3985_v48 = vpop.f32.mrb[19].mxu0  ;;  %v2332_v49 = vsel %vm2106_vm4, %v2327_v26, -inf }
 0x4b4   : > { %2333 = vmax.xlane.f32.xlu0 %v2332_v49 }
 0x4ca   : > { %2453 = vrot.lane.b32.xlu0 %v2049_v39, %s4795_s23 }
 0x4ce   : > { %2618 = vrot.lane.b32.xlu0 %v2047_v50, %s4795_s23 }
 0x4d2   : > { %2615 = vrot.lane.b32.xlu0 %v2044_v51, %s4795_s23 }
 0x541   : > { %v2334_v53 = vpop.xlane.xlu0 %2333 }
 0x542   : > { %v2335_v54 = vsub.f32 %v2327_v26, %v2334_v53 }
 0x544   : > { %v2336_v52 = vmul.f32 1.442695, %v2335_v54  ;;  %v2224_v54 = vsel %vm2106_vm4, %v5100_v36, 0.0 }
 0x545   : > { %v2454_v25 = vpop.permute.xlu0 %2453 }
 0x546   : > { %4589 = vpow2.f32 %v2336_v52  ;;  %v2459_v59 = vsel %vm2120_vm2, %v2454_v25, 0  ;;  %v4488_v52 = vld [vmem:[#allocation8] ss:$12 sps:$4 sm:$0xff]   ;;  %v4494_v25 = vld [vmem:[#allocation8 + $0x30] ss:$12 sps:$4 sm:$0xff]  }
 0x549   : > { %v2619_v61 = vpop.permute.xlu0 %2618 }
 0x54a   : > { %v2624_v28 = vsel %vm2059_vm1, %v2619_v61, 0  ;;  %v4514_v61 = vld [vmem:[#allocation8 + $0xc4] ss:$12 sps:$4 sm:$0xff]  }
 0x54d   : > { %v2616_v30 = vpop.permute.xlu0 %2615 }
 0x550   : > { %v5125_v55 = vpop.eup %4589 }
 0x551   : > { %v2341_v57 = vpack.c.bf16 %v5125_v55, %v5125_v55 }
 0x553   : > { %3989 = vmatmul.mubr.msk.bf16.vlgmr.msra.gmra.mrb[20].mxu0 %vm2106_vm4, %v2341_v57  ;;  %v4493_v57 = vld [vmem:[#allocation8 + $0x1c] ss:$12 sps:$4 sm:$0xff]  }
 0x554   : > { %3993 = vmatpush3.bf16.xpose.msra.mxu0 %v2400_v58  ;;  %3994 = vmatprep.mubr.msk.bf16.mxu0 %vm4793_vm0, %v4792_v29  ;;  %v4491_v58 = vld [vmem:[#allocation8 + $0x18] ss:$12 sps:$4 sm:$0xff]  }
 0x555   : > { %3998 = vmatprep.subr.bf16.mxu0 %v4792_v29 }
 0x55b   : > { %3995 = vmatmul.mubr.msk.bf16.vlgmr.msra.gmra.mrb[24].mxu0 %vm2059_vm1, %v2392_v2  ;;  %v4497_v2 = vld [vmem:[#allocation8 + $0x48] ss:$12 sps:$4 sm:$0xff]  }
 0x55c   : > { %3999 = vmatpush3.bf16.msra.mxu0 %v2459_v59  ;;  %4000 = vmatprep.mubr.msk.bf16.mxu0 %vm4793_vm0, %v4792_v29  ;;  %v4499_v59 = vld [vmem:[#allocation8 + $0x4c] ss:$12 sps:$4 sm:$0xff]  }
 0x55d   : > { %4004 = vmatprep.subr.bf16.mxu0 %v4792_v29 }
 0x626   : > { %v5139_v60 = vpop.f32.mrb[20].mxu0 }
 0x627   : > { %v3990_v62 = vpop.f32.mrb[21].mxu0 }
 0x628   : > { %v2385_v63 = vpop.f32.mrb[22].mxu0 }
 0x629   : > { %v3991_v0 = vpop.f32.mrb[23].mxu0 }
 0x62e   : > { %v2436_v1 = vpop.f32.mrb[24].mxu0 }
 0x62f   : > { %v2437_v3 = vadd.f32 %v2436_v1, %v5091_v19  ;;  %v3996_v4 = vpop.f32.mrb[25].mxu0 }
 0x630   : > { %v2439_v5 = vpop.f32.mrb[26].mxu0 }
 0x631   : > { %v3997_v7 = vpop.f32.mrb[27].mxu0  ;;  %v2442_v8 = vsel %vm2106_vm4, %v2437_v3, -inf }
 0x632   : > { %2443 = vmax.xlane.f32.xlu1 %v2442_v8 }
 0x636   : > { %2108 = vmax.xlane.f32.xlu1 %v2107_v9 }
 0x6bf   : > { %v2444_v11 = vpop.xlane.xlu1 %2443 }
 0x6c0   : > { %v2445_v13 = vsub.f32 %v2437_v3, %v2444_v11 }
 0x6c2   : > { %v2446_v14 = vmul.f32 1.442695, %v2445_v13 }
 0x6c3   : > { %v2109_v16 = vpop.xlane.xlu1 %2108 }
 0x6c4   : > { %4591 = vpow2.f32 %v2446_v14  ;;  %v2110_v12 = vsub.f32 %v2101_v6, %v2109_v16  ;;  %v4500_v16 = vld [vmem:[#allocation8 + $0x60] ss:$12 sps:$4 sm:$0xff]  }
 0x6c6   : > { %v2111_v18 = vmul.f32 1.442695, %v2110_v12  ;;  %v4502_v12 = vld [vmem:[#allocation8 + $0x64] ss:$12 sps:$4 sm:$0xff]  }
 0x6c8   : > { %4593 = vpow2.f32 %v2111_v18  ;;  %v2338_v18 = vsel %vm2106_vm4, %v5125_v55, 0.0  ;;  %v4519_v55 = vld [vmem:[#allocation8 + $0xdc] ss:$12 sps:$4 sm:$0xff]  }
 0x6ce   : > { %v4592_v20 = vpop.eup %4591 }
 0x6cf   : > { %v2451_v21 = vpack.c.bf16 %v4592_v20, %v4592_v20  ;;  %v2448_v46 = vsel %vm2106_vm4, %v4592_v20, 0.0  ;;  %v4505_v20 = vld [vmem:[#allocation8 + $0x7c] ss:$12 sps:$4 sm:$0xff]  }
 0x6d1   : > { %4001 = vmatmul.mubr.msk.bf16.vlgmr.msra.gmra.mrb[28].mxu0 %vm2106_vm4, %v2451_v21  ;;  %v4503_v21 = vld [vmem:[#allocation8 + $0x78] ss:$12 sps:$4 sm:$0xff]  }
 0x6d2   : > { %v5150_v23 = vpop.eup %4593  ;;  %4005 = vmatpush3.bf16.xpose.msra.mxu0 %v2514_v22  ;;  %4006 = vmatprep.mubr.msk.bf16.mxu0 %vm4793_vm0, %v4792_v29  ;;  %v4508_v22 = vld [vmem:[#allocation8 + $0x94] ss:$12 sps:$4 sm:$0xff]  }
 0x6d3   : > { %v2116_v24 = vpack.c.bf16 %v5150_v23, %v5150_v23  ;;  %4016 = vmatprep.subr.bf16.mxu0 %v4792_v29  ;;  %v2113_v14 = vsel %vm2106_vm4, %v5150_v23, 0.0  ;;  %v4512_v23 = vld [vmem:[#allocation8 + $0xc0] ss:$12 sps:$4 sm:$0xff]  }
 0x6d5   : > { %3965 = vmatmul.mubr.msk.bf16.vlgmr.msra.gmra.mrb[20].mxu1 %vm2106_vm4, %v2116_v24  ;;  %v4509_v24 = vld [vmem:[#allocation8 + $0xa8] ss:$12 sps:$4 sm:$0xff]  }
 0x6d6   : > { %4011 = vmatpush3.bf16.msra.mxu1 %v2570_v27  ;;  %4012 = vmatprep.mubr.msk.bf16.mxu1 %vm4793_vm0, %v4792_v29  ;;  %v4511_v27 = vld [vmem:[#allocation8 + $0xac] ss:$12 sps:$4 sm:$0xff]  }
 0x6d7   : > { %4022 = vmatprep.subr.bf16.mxu1 %v4792_v29 }
 0x6d9   : > { %4007 = vmatmul.mubr.msk.bf16.vlgmr.msra.gmra.mrb[32].mxu0 %vm2059_vm1, %v2044_v51 }
 0x6da   : > { %4017 = vmatpush3.bf16.xpose.msra.mxu0 %v2624_v28  ;;  %4018 = vmatprep.mubr.msk.bf16.mxu0 %vm4793_vm0, %v4792_v29  ;;  %v4515_v28 = vld [vmem:[#allocation8 + $0xc8] ss:$12 sps:$4 sm:$0xff]  }
 0x6db   : > { %3244 = vmatprep.subr.bf16.mxu0 %v4490_v56  ;;  %v4544_v56 = vld [vmem:[#allocation8 + $0x154] ss:$12 sps:$4 sm:$0xff]  }
 0x6e1   : > { %4019 = vmatmul.mubr.msk.bf16.vlgmr.msra.gmra.mrb[36].mxu0 %vm2059_vm1, %v2616_v30  ;;  %v4516_v30 = vld [vmem:[#allocation8 + $0x8] ss:$12 sps:$4 sm:$0xff]  }
 0x6e2   : > { %3245 = vmatpush1.bf16.msra.mxu0 %v4488_v52  ;;  %v4541_v52 = vld [vmem:[#allocation8 + $0x80] ss:$12 sps:$4 sm:$0xff]  }
 0x6e3   : > { %3246 = vmatprep.subr.bf16.mxu0 %v4493_v57  ;;  %v4545_v57 = vld [vmem:[#allocation8 + $0x158] ss:$12 sps:$4 sm:$0xff]  }
 0x6e6   : > { %3247 = vmatpush1.bf16.msra.mxu0 %v4491_v58 }
 0x7a4   : > { %v5167_v31 = vpop.f32.mrb[28].mxu0 }
 0x7a5   : > { %v4002_v32 = vpop.f32.mrb[29].mxu0 }
 0x7a6   : > { %v2498_v33 = vpop.f32.mrb[30].mxu0  ;;  %v4520_v32 = vld [vmem:[#allocation8 + $0xe0] ss:$12 sps:$4 sm:$0xff]  }
 0x7a7   : > { %v4003_v34 = vpop.f32.mrb[31].mxu0  ;;  %v4517_v33 = vld [vmem:[#allocation8 + $0xd8] ss:$12 sps:$4 sm:$0xff]  }
 0x7a8   : > { %v5169_v35 = vpop.f32.mrb[20].mxu1  ;;  %v4521_v34 = vld [vmem:[#allocation8 + $0x20] ss:$12 sps:$4 sm:$0xff]  }
 0x7a9   : > { %v3966_v37 = vpop.f32.mrb[21].mxu1 }
 0x7aa   : > { %v2161_v38 = vpop.f32.mrb[22].mxu1  ;;  %v4524_v37 = vld [vmem:[#allocation8 + $0xf4] ss:$12 sps:$4 sm:$0xff]  }
 0x7ab   : > { %v3967_v39 = vpop.f32.mrb[23].mxu1  ;;  %v4525_v38 = vld [vmem:[#allocation8 + $0xf8] ss:$12 sps:$4 sm:$0xff]  }
 0x7ac   : > { %v2550_v40 = vpop.f32.mrb[32].mxu0  ;;  %v4522_v39 = vld [vmem:[#allocation8 + $0xf0] ss:$12 sps:$4 sm:$0xff]  }
 0x7ad   : > { %v2551_v42 = vadd.f32 %v2550_v40, %v5091_v19  ;;  %v4008_v43 = vpop.f32.mrb[33].mxu0  ;;  %v4526_v40 = vld [vmem:[#allocation8 + $0x38] ss:$12 sps:$4 sm:$0xff]  }
 0x7ae   : > { %v2553_v44 = vpop.f32.mrb[34].mxu0  ;;  %v4530_v43 = vld [vmem:[#allocation8 + $0x110] ss:$12 sps:$4 sm:$0xff]  }
 0x7af   : > { %v4009_v45 = vpop.f32.mrb[35].mxu0  ;;  %v2556_v26 = vsel %vm2106_vm4, %v2551_v42, -inf }
 0x7b0   : > { %2557 = vmax.xlane.f32.xlu0 %v2556_v26  ;;  %v4527_v45 = vld [vmem:[#allocation8 + $0x108] ss:$12 sps:$4 sm:$0xff]   ;;  %v4531_v26 = vld [vmem:[#allocation8 + $0x50] ss:$12 sps:$4 sm:$0xff]  }
 0x7b4   : > { %2449 = vadd.xlane.f32.xlu0 %v2448_v46  ;;  %v2660_v47 = vpop.f32.mrb[36].mxu0 }
 0x7b5   : > { %v2661_v48 = vadd.f32 %v2660_v47, %v5091_v19  ;;  %v4020_v49 = vpop.f32.mrb[37].mxu0  ;;  %v4496_v19 = vld [vmem:[#allocation8 + $0x34] ss:$12 sps:$4 sm:$0xff]   ;;  %v4534_v47 = vld [vmem:[#allocation8 + $0x124] ss:$12 sps:$4 sm:$0xff]  }
 0x7b6   : > { %v2663_v50 = vpop.f32.mrb[38].mxu0  ;;  %3248 = vmatprep.subr.bf16.mxu0 %v4496_v19  ;;  %v4532_v49 = vld [vmem:[#allocation8 + $0x120] ss:$12 sps:$4 sm:$0xff]   ;;  %v4542_v19 = vld [vmem:[#allocation8 + $0x150] ss:$12 sps:$4 sm:$0xff]  }
 0x7b7   : > { %v4021_v51 = vpop.f32.mrb[39].mxu0  ;;  %v2666_v53 = vsel %vm2106_vm4, %v2661_v48, -inf  ;;  %3249 = vmatpush1.bf16.msra.mxu0 %v4494_v25  ;;  %v4536_v50 = vld [vmem:[#allocation8 + $0x68] ss:$12 sps:$4 sm:$0xff]   ;;  %v4546_v25 = vld [vmem:[#allocation8 + $0x98] ss:$12 sps:$4 sm:$0xff]  }
 0x7b8   : > { %2667 = vmax.xlane.f32.xlu1 %v2666_v53  ;;  %3250 = vmatprep.subr.bf16.mxu0 %v4499_v59  ;;  %v4539_v51 = vld [vmem:[#allocation8 + $0x13c] ss:$12 sps:$4 sm:$0xff]   ;;  %v4540_v53 = vld [vmem:[#allocation8 + $0x140] ss:$12 sps:$4 sm:$0xff]  }
 0x7b9   : > { %v4549_v59 = vld [vmem:[#allocation8 + $0x16c] ss:$12 sps:$4 sm:$0xff]  }
 0x7bb   : > { %3251 = vmatpush1.bf16.msra.mxu0 %v4497_v2  ;;  %v4550_v2 = vld [vmem:[#allocation8 + $0x170] ss:$12 sps:$4 sm:$0xff]  }
 0x7bc   : > { %3252 = vmatprep.subr.bf16.mxu0 %v4502_v12 }
 0x7bf   : > { %3253 = vmatpush1.bf16.msra.mxu0 %v4500_v16 }
 0x7c0   : > { %3254 = vmatprep.subr.bf16.mxu0 %v4505_v20 }
 0x7c3   : > { %3255 = vmatpush1.bf16.msra.mxu0 %v4503_v21 }
 0x7c4   : > { %3256 = vmatprep.subr.bf16.mxu0 %v4508_v22 }
 0x7c9   : > { %2677 = vrot.lane.b32.xlu1 %v2050_v10, %s4795_s23  ;;  %v4506_v10 = vld [vmem:[#allocation8 + $0x90] ss:$12 sps:$4 sm:$0xff]  }
 0x7ca   : > { %3257 = vmatpush1.bf16.msra.mxu0 %v4506_v10 }
 0x7cb   : > { %3258 = vmatprep.subr.bf16.mxu0 %v4511_v27  ;;  %v4557_v27 = vld [vmem:[#allocation8 + $0x188] ss:$12 sps:$4 sm:$0xff]  }
 0x7ce   : > { %3259 = vmatpush1.bf16.msra.mxu0 %v4509_v24  ;;  %v4554_v24 = vld [vmem:[#allocation8 + $0x180] ss:$12 sps:$4 sm:$0xff]  }
 0x7cf   : > { %3260 = vmatprep.subr.bf16.mxu0 %v4514_v61  ;;  %v4564_v61 = vld [vmem:[#allocation8 + $0x1b4] ss:$12 sps:$4 sm:$0xff]  }
 0x7d2   : > { %3261 = vmatpush1.bf16.msra.mxu0 %v4512_v23  ;;  %v4560_v23 = vld [vmem:[#allocation8 + $0x19c] ss:$12 sps:$4 sm:$0xff]  }
 0x7d3   : > { %3262 = vmatprep.subr.bf16.mxu0 %v4519_v55  ;;  %v4568_v55 = vld [vmem:[#allocation8 + $0x1cc] ss:$12 sps:$4 sm:$0xff]  }
 0x7d6   : > { %3263 = vmatpush1.bf16.msra.mxu0 %v4517_v33  ;;  %v4569_v33 = vld [vmem:[#allocation8 + $0x1d0] ss:$12 sps:$4 sm:$0xff]  }
 0x7d7   : > { %3264 = vmatprep.subr.bf16.mxu0 %v4524_v37  ;;  %v4573_v37 = vld [vmem:[#allocation8 + $0x1e8] ss:$12 sps:$4 sm:$0xff]  }
 0x7da   : > { %3265 = vmatpush1.bf16.msra.mxu0 %v4522_v39  ;;  %v4574_v39 = vld [vmem:[#allocation8 + $0x1f8] ss:$12 sps:$4 sm:$0xff]  }
 0x7ed   : > { %2225 = vadd.xlane.f32.xlu1 %v2224_v54  ;;  %v4537_v54 = vld [vmem:[#allocation8 + $0x138] ss:$12 sps:$4 sm:$0xff]  }
 0x83d   : > { %v2558_v62 = vpop.xlane.xlu0 %2557 }
 0x83e   : > { %v2559_v63 = vsub.f32 %v2551_v42, %v2558_v62  ;;  %v4529_v42 = vld [vmem:[#allocation8 + $0x10c] ss:$12 sps:$4 sm:$0xff]  }
 0x83f   : > { %3266 = vmatprep.subr.bf16.mxu0 %v4529_v42 }
 0x840   : > { %v2560_v36 = vmul.f32 1.442695, %v2559_v63  ;;  %3267 = vmatpush1.bf16.msra.mxu0 %v4527_v45  ;;  %v4580_v45 = vld [vmem:[#allocation8 + $0x214] ss:$12 sps:$4 sm:$0xff]  }
 0x841   : > { %v2450_v44 = vpop.xlane.xlu0 %2449  ;;  %3268 = vmatprep.subr.bf16.mxu0 %v4534_v47 }
 0x842   : > { %4595 = vpow2.f32 %v2560_v36 }
 0x844   : > { %3269 = vmatpush1.bf16.msra.mxu0 %v4532_v49  ;;  %v4582_v49 = vld [vmem:[#allocation8 + $0x228] ss:$12 sps:$4 sm:$0xff]  }
 0x845   : > { %v2668_v0 = vpop.xlane.xlu1 %2667  ;;  %3270 = vmatprep.subr.bf16.mxu0 %v4539_v51 }
 0x846   : > { %v2669_v1 = vsub.f32 %v2661_v48, %v2668_v0  ;;  %v4535_v48 = vld [vmem:[#allocation8 + $0x128] ss:$12 sps:$4 sm:$0xff]  }
 0x847   : > { %v4547_v0 = vld [vmem:[#allocation8 + $0x168] ss:$12 sps:$4 sm:$0xff]  }
 0x848   : > { %v2670_v3 = vmul.f32 1.442695, %v2669_v1  ;;  %3271 = vmatpush1.bf16.msra.mxu0 %v4537_v54  ;;  %v4551_v1 = vld [vmem:[#allocation8 + $0xb0] ss:$12 sps:$4 sm:$0xff]  }
 0x849   : > { %v2678_v5 = vpop.permute.xlu1 %2677  ;;  %3272 = vmatprep.subr.bf16.mxu0 %v4544_v56 }
 0x84a   : > { %4597 = vpow2.f32 %v2670_v3  ;;  %v2683_v8 = vsel %vm2120_vm2, %v2678_v5, 0 }
 0x84b   : > { %4599 = vrcp.f32 %v2450_v44  ;;  %v4578_v44 = vld [vmem:[#allocation8 + $0x210] ss:$12 sps:$4 sm:$0xff]  }
 0x84c   : > { %v4596_v4 = vpop.eup %4595  ;;  %3273 = vmatpush1.bf16.msra.mxu0 %v4542_v19 }
 0x84d   : > { %v2562_v6 = vsel %vm2106_vm4, %v4596_v4, 0.0  ;;  %v2565_v7 = vpack.c.bf16 %v4596_v4, %v4596_v4  ;;  %3274 = vmatprep.subr.bf16.mxu0 %v4549_v59  ;;  %v4556_v4 = vld [vmem:[#allocation8 + $0x184] ss:$12 sps:$4 sm:$0xff]  }
 0x84e   : > { %2563 = vadd.xlane.f32.xlu1 %v2562_v6 }
 0x84f   : > { %4013 = vmatmul.mubr.msk.bf16.vlgmr.msra.gmra.mrb[24].mxu1 %vm2106_vm4, %v2565_v7 }
 0x850   : > { %4023 = vmatpush3.bf16.msra.mxu1 %v2683_v8  ;;  %4024 = vmatprep.mubr.msk.bf16.mxu1 %vm4793_vm0, %v4792_v29 }
 0x851   : > { %3905 = vmatprep.subr.bf16.mxu1 %v4515_v28  ;;  %3275 = vmatpush1.bf16.msra.mxu0 %v4547_v0  ;;  %v4562_v28 = vld [vmem:[#allocation8 + $0x1b0] ss:$12 sps:$4 sm:$0xff]  }
 0x852   : > { %3285 = vmatprep.subr.bf16.mxu0 %v4556_v4  ;;  %v2844_v4 = vsub.s32 2, %v5088_v17 }
 0x854   : > { %v4598_v9 = vpop.eup %4597 }
 0x855   : > { %v2672_v11 = vsel %vm2106_vm4, %v4598_v9, 0.0  ;;  %v2675_v13 = vpack.c.bf16 %v4598_v9, %v4598_v9  ;;  %v4600_v58 = vpop.eup %4599 }
 0x856   : > { %2673 = vadd.xlane.f32.xlu0 %v2672_v11  ;;  %v2502_v36 = vmul.f32 %v4600_v58, %v5167_v31 }
 0x857   : > { %4025 = vmatmul.mubr.msk.bf16.vlgmr.msra.gmra.mrb[28].mxu1 %vm2106_vm4, %v2675_v13 }
 0x858   : > { %3906 = vmatpush3.bf16.msra.mxu1 %v4516_v30  ;;  %v4565_v30 = vld [vmem:[#allocation8 + $0x1b8] ss:$12 sps:$4 sm:$0xff]  }
 0x859   : > { %3907 = vmatprep.subr.bf16.mxu1 %v4520_v32  ;;  %v4566_v32 = vld [vmem:[#allocation8 + $0x1c8] ss:$12 sps:$4 sm:$0xff]  }
 0x85a   : > { %2114 = vadd.xlane.f32.xlu0 %v2113_v14 }
 0x85c   : > { %3908 = vmatpush3.bf16.msra.mxu1 %v4521_v34  ;;  %v4572_v34 = vld [vmem:[#allocation8 + $0x1e4] ss:$12 sps:$4 sm:$0xff]  }
 0x85d   : > { %3909 = vmatprep.subr.bf16.mxu1 %v4525_v38  ;;  %v4576_v38 = vld [vmem:[#allocation8 + $0x1fc] ss:$12 sps:$4 sm:$0xff]  }
 0x85e   : > { %2339 = vadd.xlane.f32.xlu0 %v2338_v18 }
 0x860   : > { %3910 = vmatpush3.bf16.msra.mxu1 %v4526_v40  ;;  %v4577_v40 = vld [vmem:[#allocation8 + $0x200] ss:$12 sps:$4 sm:$0xff]  }
 0x861   : > { %3911 = vmatprep.subr.bf16.mxu1 %v4530_v43 }
 0x864   : > { %3912 = vmatpush3.bf16.msra.mxu1 %v4531_v26 }
 0x865   : > { %3913 = vmatprep.subr.bf16.mxu1 %v4535_v48  ;;  %v4584_v48 = vld [vmem:[#allocation8 + $0x22c] ss:$12 sps:$4 sm:$0xff]  }
 0x868   : > { %3914 = vmatpush3.bf16.msra.mxu1 %v4536_v50  ;;  %v4585_v50 = vld [vmem:[#allocation8 + $0x230] ss:$12 sps:$4 sm:$0xff]  }
 0x869   : > { %3915 = vmatprep.subr.bf16.mxu1 %v4540_v53 }
 0x86c   : > { %3916 = vmatpush3.bf16.msra.mxu1 %v4541_v52 }
 0x86d   : > { %3917 = vmatprep.subr.bf16.mxu1 %v4545_v57 }
 0x870   : > { %3918 = vmatpush3.bf16.msra.mxu1 %v4546_v25 }
 0x871   : > { %3919 = vmatprep.subr.bf16.mxu1 %v4550_v2 }
 0x874   : > { %3920 = vmatpush3.bf16.msra.mxu1 %v4551_v1 }
 0x875   : > { %4028 = vmatprep.subr.bf16.mxu1 %v4792_v29 }
 0x87a   : > { %v2226_v46 = vpop.xlane.xlu1 %2225 }
 0x87b   : > { %4601 = vrcp.f32 %v2226_v46  ;;  %v4581_v46 = vld [vmem:[#allocation8 + $0x218] ss:$12 sps:$4 sm:$0xff]  }
 0x885   : > { %v4602_v62 = vpop.eup %4601 }
 0x886   : > { %v2278_v63 = vmul.f32 %v4602_v62, %v5114_v41 }
 0x888   : > { %v4167_v3 = vpack.i.bf16 %v2502_v36, %v2278_v63 }
 0x88a   : > { %4168 = vrot.lane.b32.xlu0 %v4167_v3, %s4795_s23 }
 0x8db   : > { %v2564_v58 = vpop.xlane.xlu1 %2563 }
 0x8e3   : > { %v2674_v5 = vpop.xlane.xlu0 %2673 }
 0x8e7   : > { %v2115_v6 = vpop.xlane.xlu0 %2114 }
 0x8e8   : > { %4603 = vrcp.f32 %v2115_v6  ;;  %v2836_v6 = vsub.s32 0, %v5088_v17 }
 0x8eb   : > { %v2340_v41 = vpop.xlane.xlu0 %2339 }
 0x8ec   : > { %4605 = vrcp.f32 %v2340_v41  ;;  %v2840_v41 = vsub.s32 1, %v5088_v17 }
 0x8ed   : > { %4607 = vrcp.f32 %v2674_v5  ;;  %v2832_v5 = vld [vmem:[%s5273_s3] sm:$0x7] }
 0x8ee   : > { %4609 = vrcp.f32 %v2564_v58 }
 0x8f2   : > { %v4604_v31 = vpop.eup %4603 }
 0x8f3   : > { %v2165_v14 = vmul.f32 %v4604_v31, %v5169_v35  ;;  %v4561_v35 = vld [vmem:[#allocation8 + $0x1a0] ss:$12 sps:$4 sm:$0xff]   ;;  %v2845_v31 = vrot.slane %v2832_v5, %v2844_v4 }
 0x8f6   : > { %v4606_v7 = vpop.eup %4605 }
 0x8f7   : > { %v2389_v9 = vmul.f32 %v4606_v7, %v5139_v60  ;;  %v4558_v60 = vld [vmem:[#allocation8 + $0x198] ss:$12 sps:$4 sm:$0xff]   ;;  %v4608_v51 = vpop.eup %4607  ;;  %v2837_v7 = vrot.slane %v2832_v5, %v2836_v6 }
 0x8f8   : > { %v4610_v19 = vpop.eup %4609 }
 0x8fc   : > { %v4169_v8 = vpop.permute.xlu0 %4168 }
 0x8fd   : > { %v4171_v11 = vunpack.i.h.bf16 %v4169_v8  ;;  %v4170_v13 = vunpack.i.l.bf16 %v4169_v8  ;;  %v2841_v8 = vrot.slane %v2832_v5, %v2840_v41 }
 0x8ff   : > { %v2507_v16 = vsel %vm2059_vm1, %v2389_v9, %v4171_v11  ;;  %v2283_v12 = vsel %vm2059_vm1, %v2165_v14, %v4170_v13 }
 0x900   : > { %v2508_v18 = vpack.c.bf16 %v2507_v16, %v2507_v16  ;;  %v2284_v20 = vpack.c.bf16 %v2283_v12, %v2283_v12 }
 0x902   : > { %2509 = vst [vmem:[#allocation2 + $0x4] sm:$0xf] %v2508_v18  ;;  %2285 = vst [vmem:[#allocation2] sm:$0xf] %v2284_v20 }
 0x909   : > { %v2734_v21 = vld [vmem:[#allocation2] sm:$0xff] }
 0x90a   : > { %v3772_v10 = vcombine.low %v2734_v21, %v2734_v21  ;;  %v3773_v22 = vcombine.high %v2734_v21, %v2734_v21 }
 0x90c   : > { %3276 = vmatprep.mubr.bf16.mxu0 %v3773_v22  ;;  %3358 = vmatprep.mubr.bf16.mxu1 %v3773_v22 }
 0x90d   : > { %3277 = vmatmul.mubr.bf16.vlgmr.msra.gmra.mrb[40].mxu0 %v3772_v10  ;;  %3359 = vmatmul.mubr.bf16.vlgmr.msra.gmra.mrb[32].mxu1 %v3772_v10 }
 0x90e   : > { %3286 = vmatpush1.bf16.msra.mxu0 %v4554_v24  ;;  %4029 = vmatpush3.bf16.msra.mxu1 %v4557_v27 }
 0x90f   : > { %3287 = vmatprep.subr.bf16.mxu0 %v4560_v23  ;;  %4030 = vmatprep.subr.bf16.mxu1 %v4792_v29 }
 0x910   : > { %3317 = vmatprep.mubr.bf16.mxu0 %v4794_v15  ;;  %4044 = vmatprep.mubr.msk.bf16.mxu1 %vm4793_vm0, %v4792_v29  ;;  %v4570_v15 = vld [vmem:[#allocation8 + $0x1e0] ss:$12 sps:$4 sm:$0xff]  }
 0x912   : > { %3288 = vmatpush1.bf16.msra.mxu0 %v4558_v60  ;;  %4031 = vmatpush3.bf16.msra.mxu1 %v4561_v35 }
 0x913   : > { %3289 = vmatprep.subr.bf16.mxu0 %v4564_v61  ;;  %4032 = vmatprep.subr.bf16.mxu1 %v4792_v29 }
 0x916   : > { %3290 = vmatpush1.bf16.msra.mxu0 %v4562_v28  ;;  %4033 = vmatpush3.bf16.msra.mxu1 %v4565_v30 }
 0x917   : > { %3291 = vmatprep.subr.bf16.mxu0 %v4568_v55  ;;  %4034 = vmatprep.subr.bf16.mxu1 %v4792_v29 }
 0x91a   : > { %3292 = vmatpush1.bf16.msra.mxu0 %v4566_v32  ;;  %4035 = vmatpush3.bf16.msra.mxu1 %v4569_v33 }
 0x91b   : > { %3293 = vmatprep.subr.bf16.mxu0 %v4572_v34  ;;  %4036 = vmatprep.subr.bf16.mxu1 %v4792_v29 }
 0x91e   : > { %3294 = vmatpush1.bf16.msra.mxu0 %v4570_v15  ;;  %4037 = vmatpush3.bf16.msra.mxu1 %v4573_v37 }
 0x91f   : > { %4038 = vmatprep.subr.bf16.mxu1 %v4792_v29  ;;  %3295 = vmatprep.subr.bf16.mxu0 %v4576_v38 }
 0x922   : > { %v2606_v42 = vpop.f32.mrb[24].mxu1  ;;  %3296 = vmatpush1.bf16.msra.mxu0 %v4574_v39  ;;  %4039 = vmatpush3.bf16.msra.mxu1 %v4577_v40 }
 0x923   : > { %v4014_v43 = vpop.f32.mrb[25].mxu1  ;;  %4040 = vmatprep.subr.bf16.mxu1 %v4792_v29  ;;  %3297 = vmatprep.subr.bf16.mxu0 %v4580_v45  ;;  %v2613_v25 = vmul.f32 %v4610_v19, %v2606_v42 }
 0x924   : > { %v2609_v26 = vpop.f32.mrb[26].mxu1 }
 0x925   : > { %v4015_v47 = vpop.f32.mrb[27].mxu1 }
 0x926   : > { %3298 = vmatpush1.bf16.msra.mxu0 %v4578_v44  ;;  %4041 = vmatpush3.bf16.msra.mxu1 %v4581_v46 }
 0x927   : > { %3299 = vmatprep.subr.bf16.mxu0 %v4584_v48  ;;  %4042 = vmatprep.subr.bf16.mxu1 %v4792_v29 }
 0x92a   : > { %v2719_v53 = vpop.f32.mrb[28].mxu1  ;;  %3300 = vmatpush1.bf16.msra.mxu0 %v4582_v49  ;;  %4043 = vmatpush3.bf16.msra.mxu1 %v4585_v50 }
 0x92b   : > { %v2726_v54 = vmul.f32 %v4608_v51, %v2719_v53  ;;  %v4026_v52 = vpop.f32.mrb[29].mxu1 }
 0x92c   : > { %v2722_v56 = vpop.f32.mrb[30].mxu1 }
 0x92d   : > { %2728 = vrot.lane.b32.xlu1 %v2726_v54, %s4795_s23  ;;  %v4027_v57 = vpop.f32.mrb[31].mxu1 }
 0x99f   : > { %v2729_v59 = vpop.permute.xlu1 %2728 }
 0x9a0   : > { %v2731_v2 = vsel %vm2059_vm1, %v2613_v25, %v2729_v59 }
 0x9a1   : > { %v2732_v62 = vpack.c.bf16 %v2731_v2, %v2731_v2 }
 0x9a3   : > { %2733 = vst [vmem:[#allocation2 + $0x8] sm:$0xf] %v2732_v62 }
 0x9aa   : > { %v4586_v29 = vld [vmem:[#allocation2 + $0x8] ss:$0 sps:$4 sm:$0xff]  }
 0x9ab   : > { %3318 = vmatmul.mubr.bf16.vlgmr.msra.gmra.mrb[40].mxu0 %v4586_v29  ;;  %4045 = vmatmul.mubr.bf16.vlgmr.msra.gmra.mrb[36].mxu1 %v4586_v29 }
 0x9e0   : > { %v3921_v63 = vpop.f32.mrb[32].mxu1 }
 0x9e1   : > { %v3922_v36 = vpop.f32.mrb[33].mxu1 }
 0x9e2   : > { %v3923_v0 = vadd.f32 %v3922_v36, %v3921_v63  ;;  %v3924_v1 = vpop.f32.mrb[34].mxu1 }
 0x9e3   : > { %v3925_v3 = vpop.f32.mrb[35].mxu1 }
 0x9e4   : > { %v3361_v9 = vadd.f32 %v3923_v0, %v2845_v31 }
 0xa7e   : > { %v3319_v11 = vpop.f32.mrb[40].mxu0  ;;  %v3400_v13 = vpop.f32.mrb[36].mxu1 }
 0xa7f   : > { %v4048_v14 = vadd.f32 %v3319_v11, %v2837_v7  ;;  %v3401_v16 = vadd.f32 %v3400_v13, %v3361_v9  ;;  %v3321_v12 = vpop.f32.mrb[41].mxu0  ;;  %v4046_v18 = vpop.f32.mrb[37].mxu1 }
 0xa80   : > { %v4049_v20 = vadd.f32 %v3321_v12, %v2841_v8  ;;  %v3323_v21 = vpop.f32.mrb[42].mxu0  ;;  %v3403_v10 = vpop.f32.mrb[38].mxu1 }
 0xa81   : > { %3406 = vst [vmem:[%s256_s21] sm:$0xff] %v4048_v14  ;;  %3408 = vst [vmem:[%s256_s21 + $0x10] sm:$0xff] %v3401_v16  ;;  %v3324_v17 = vpop.f32.mrb[43].mxu0  ;;  %v4047_v22 = vpop.f32.mrb[39].mxu1 }
 0xa82   : > { %3407 = vst [vmem:[%s256_s21 + $0x8] sm:$0xff] %v4049_v20 }
 0xa83   : > { %4710 = shalt.err (!%p4707_p2)
}
 0xa84   : > { %s4711_s28 = scalar_lea.hbm %s5221_s24, 384  ;;  %s4715_s25 = scalar_lea.hbm %s5274_s4, 768 }
 0xa85   : > { %p4712_p0 = scmp.ne.s32.totalorder %s5221_s24, %s4711_s28  ;;  %p4716_p6 = scmp.lt.u32.totalorder %s5221_s24, %s5274_s4 }
 0xa86   : > { %p4717_p7 = scmp.lt.u32.totalorder %s4715_s25, %s4711_s28  ;;  %p4719_p8 = scmp.lt.u32.totalorder %s4711_s28, %s5221_s24 }
 0xa87   : > { %p4713_p4 = pnand %p4712_p0, %p5289_p12 }
 0xa88   : > { %p4718_p11 = por %p4717_p7, %p4716_p6 }
 0xa89   : > { %p4714_p13 = pneg %p4713_p4 }
 0xa8a   : > { %p4720_p1 = por %p4719_p8, %p4718_p11 }
 0xa8c   : > { %p4721_p10 = pnand %p4720_p1, %p4714_p13 }
 0xa8e   : > { %4724 = shalt.err (!%p4721_p10)
}
 0xa8f   : > { %4085 = dma.vmem_to_hbm [thread:$0]  (%p5289_p12), %s5223_s22, 384, %s5221_s24, %s3410_s18  }
 0xa90 PF: > { %s3438_s29 = sand.u32 1, %s4763_s15   ;;  %p5290_p3 = scmp.ne.s32.totalorder %s5282_s26, 0 }
 0xa91   : > { %p5291_p5 = scmp.ge.s32.totalorder %s4783_s20, 2  ;;  %s3439_s21 = scalar_lea.sflag [#allocation5], %s3438_s29 }
 0xa93   : > { %p4099_p9 = pnand %p5291_p5, %p5290_p3 }
 0xa95   : > { %4758 = dma.done.wait (!%p4099_p9), %s3439_s21, 384  }
 0xa96   : > { %4760 = vsyncadd (!%p4099_p9), %s3439_s21, 4294966912  ;;  %s21_s20 = sadd.s32 1, %s4783_s20   ;;  %s5292_s15 = smov %s4767_s16 }
 0xa97   : > { %p18_p2 = scmp.ge.s32.totalorder %s21_s20, 4   ;;  %s5293_s16 = smov %s4771_s17 }
 0xa98   : > { %s5294_s17 = smov %s4968_s11  ;;  %s5295_s18 = smov %s4779_s19 }
 0xa99   : > { %s5296_s19 = smov %s5298_s5  ;;  %20 = sbr.rel (!%p18_p2) target bundleno = 7 (0x7), region = 90 }
 0xaa0   :  { %3444 = vsyncpa [#allocation4], 1 }
 0xaa1   :  { %3446 = vsyncpa [#allocation4 + $0x1], 1 }
 0xaa2   :  { %3447 = vsyncpa [#allocation7], 1 }
 0xaa3   :  { %3448 = vsyncpa [#allocation5], 1 }
 0xaa4   :  { %3450 = vsyncpa [#allocation5 + $0x1], 1 }

</bundles_post_ra>
